<compile_context>
chip_gen: v6e
topology: v6e:2x2x1
jax: 0.10.0
libtpu: 0.0.40
codegen_flags: <defaults>
</compile_context>

<pallas_src>
import functools

import numpy as np
import jax
import jax.numpy as jnp
from jax.experimental import pallas as pl
from jax.experimental.pallas import tpu as pltpu

FEAT = 80         # input feature dim (LayerNorm(80), Conv1d in-channels)
HID = 64          # hidden width
KSIZE = 5         # conv kernel size
PAD = KSIZE // 2
EPS = 1e-5
LOGIT_PAD = 128   # classifier output padded to one full lane tile
MAX_ROWS = 4096   # per-grid-step row budget M = bblk * T_pad (safe on v7x)
VMEM_LIMIT = 48 * 1024 * 1024


def _layer_norm(x, gamma, beta):
    # PyTorch LayerNorm: biased variance over the last dim.
    mu = jnp.mean(x, axis=-1, keepdims=True)
    var = jnp.mean((x - mu) ** 2, axis=-1, keepdims=True)
    return (x - mu) * jax.lax.rsqrt(var + EPS) * gamma + beta


def voicemail_kernel(x_ref, vec_ref, w0_ref, w1_ref, wsq_ref, wc_ref, out_ref,
                     *, t_real):
    """One grid step == one block of `bblk` utterances, flattened to M rows."""
    bblk, t_pad, F = x_ref.shape
    M = bblk * t_pad

    # ---- packed (1, width) parameter rows (all f32) ----
    g0, be0 = vec_ref[0:1, :FEAT], vec_ref[1:2, :FEAT]
    b0, b1 = vec_ref[2:3, :HID], vec_ref[3:4, :HID]
    b2, g2 = vec_ref[4:5, :HID], vec_ref[5:6, :HID]
    be2, bq = vec_ref[6:7, :HID], vec_ref[7:8, :HID]
    bc = vec_ref[8:9, :]                                  # (1, 128), zero-padded

    # ---- fold the batch block into the matmul M dimension ----
    # t_pad % 8 == 0 (wrapper guarantees it) -> this reshape is a free relayout.
    x = x_ref[...].reshape(M, F)                          # (M, 80) f32

    # ---- LayerNorm(80) ----
    x = _layer_norm(x, g0, be0)

    # per-row time index + conv boundary masks, computed ONCE and reused by
    # both conv layers.  The masks zero taps whose source row lies outside the
    # current utterance, which also kills pltpu.roll wrap-around rows.
    t_idx = jax.lax.broadcasted_iota(jnp.int32, (M, 1), 0) % t_pad
    tap_mask = {d: jnp.logical_and(t_idx + d >= 0, t_idx + d < t_real)
                for d in range(-PAD, PAD + 1) if d != 0}

    def conv_same(h, w_ref, bias):
        # 'same' Conv1d(k=5) as 5 per-tap (M, Cin) @ (Cin, 64) bf16 MXU dots
        # summed in f32.  Taps come from an XLU sublane roll + bf16 mask --
        # no slice/concat copies, no padded scratch, no im2col store.
        acc = None
        for k in range(KSIZE):                            # static unrolled taps
            d = k - PAD
            tap = h if d == 0 else pltpu.roll(h, shift=(-d) % M, axis=0)
            tap = tap.astype(jnp.bfloat16)
            if d != 0:
                tap = jnp.where(tap_mask[d], tap, jnp.bfloat16(0.0))
            part = jnp.dot(tap, w_ref[k], preferred_element_type=jnp.float32)
            acc = part if acc is None else acc + part
        return jnp.maximum(acc + bias, 0.0)               # ReLU (dropout = id)

    h = conv_same(x, w0_ref, b0)                          # conv1d_0 + relu
    h = conv_same(h, w1_ref, b1)                          # conv1d_1 + relu

    w2, wq, wk, wv = wsq_ref[0], wsq_ref[1], wsq_ref[2], wsq_ref[3]

    # ---- Linear(64, 64) + LayerNorm(64) ----
    z = jnp.dot(h.astype(jnp.bfloat16), w2,
                preferred_element_type=jnp.float32) + b2
    z = _layer_norm(z, g2, be2)

    # ---- "attention" block exactly as written in the PyTorch forward ----
    q = jnp.dot(z.astype(jnp.bfloat16), wq,
                preferred_element_type=jnp.float32) + bq
    sim = jnp.dot(q.astype(jnp.bfloat16), wk,
                  preferred_element_type=jnp.float32)
    mmax = jnp.max(sim, axis=-1, keepdims=True)
    e = jnp.exp(sim - mmax)
    attn = e * pl.reciprocal(jnp.sum(e, axis=-1, keepdims=True), approx=True)
    v = jnp.dot(attn.astype(jnp.bfloat16), wv,
                preferred_element_type=jnp.float32)
    v = _layer_norm(v, g2, be2)                           # layer_norm_2_0 reused

    # ---- mean over time per utterance: XLU sublane reduce (no pool matmul) --
    if t_real != t_pad:                                   # static check
        v = v * (t_idx < t_real).astype(jnp.float32)      # drop padded rows
    pooled = (v.reshape(bblk, t_pad, HID).sum(axis=1)
              * jnp.float32(1.0 / t_real))                # (bblk, 64)

    # ---- classification head, lane-dense (padded to 128 columns) ----
    logits = jnp.dot(pooled.astype(jnp.bfloat16), wc_ref[...],
                     preferred_element_type=jnp.float32) + bc
    out_ref[0] = logits                                   # (bblk, 128)


# ----------------------------------------------------------------------------
# Wrapper
# ----------------------------------------------------------------------------

def _pack_params(p):
    """Pack tiny vectors into one f32 slab; weights into bf16 matmul slabs."""
    num_labels = p["wc"].shape[1]
    assert num_labels <= LOGIT_PAD
    vecs = jnp.zeros((16, LOGIT_PAD), jnp.float32)
    rows = [("g0", FEAT), ("be0", FEAT), ("b0", HID), ("b1", HID),
            ("b2", HID), ("g2", HID), ("be2", HID), ("bq", HID),
            ("bc", num_labels)]
    for i, (name, w) in enumerate(rows):
        vecs = vecs.at[i, :w].set(p[name].reshape(-1).astype(jnp.float32))
    w0 = p["w0"].astype(jnp.bfloat16)                     # (5, 80, 64) per-tap
    w1 = p["w1"].astype(jnp.bfloat16)                     # (5, 64, 64) per-tap
    wsq = jnp.stack([p["w2"], p["wq"], p["wk"], p["wv"]]).astype(jnp.bfloat16)
    wcp = (jnp.zeros((HID, LOGIT_PAD), jnp.float32)
           .at[:, :num_labels].set(p["wc"]).astype(jnp.bfloat16))   # (64, 128)
    return vecs, w0, w1, wsq, wcp


def _const_spec(shape):
    nd = len(shape)
    return pl.BlockSpec(shape, lambda i, _nd=nd: (0,) * _nd)


def _choose_blocking(B, t_pad, max_rows=MAX_ROWS):
    """bblk bounded by the per-step row budget, with >= 2 grid steps for B>=2
    (so v7x's two TensorCores both get work).  B is padded by the caller."""
    bblk_cap = max(1, max_rows // t_pad)
    bblk = min(bblk_cap, pl.cdiv(B, 2)) if B >= 2 else 1
    nblk = pl.cdiv(B, bblk)
    return bblk, nblk


def voicemail_forward(x, params):
    """x: (B, T, 80) float32 -> logits (B, num_labels) float32."""
    B, T, F = x.shape
    assert F == FEAT
    num_labels = params["wc"].shape[1]
    vecs, w0, w1, wsq, wcp = _pack_params(params)

    t_pad = ((T + 7) // 8) * 8                    # sublane-aligned time
    bblk, nblk = _choose_blocking(B, t_pad)
    b_pad = bblk * nblk

    xp = x
    if t_pad != T or b_pad != B:
        xp = jnp.pad(x, ((0, b_pad - B), (0, t_pad - T), (0, 0)))

    kernel = functools.partial(voicemail_kernel, t_real=T)

    grid_spec = pltpu.PrefetchScalarGridSpec(
        num_scalar_prefetch=0,
        grid=(nblk,),
        in_specs=[pl.BlockSpec((bblk, t_pad, FEAT), lambda i: (i, 0, 0)),
                  _const_spec(vecs.shape),
                  _const_spec(w0.shape),
                  _const_spec(w1.shape),
                  _const_spec(wsq.shape),
                  _const_spec(wcp.shape)],
        out_specs=pl.BlockSpec((1, bblk, LOGIT_PAD), lambda i: (i, 0, 0)),
    )

    out = pl.pallas_call(
        kernel,
        out_shape=jax.ShapeDtypeStruct((nblk, bblk, LOGIT_PAD), jnp.float32),
        grid_spec=grid_spec,
        compiler_params=pltpu.CompilerParams(
            dimension_semantics=("parallel",),
            vmem_limit_bytes=VMEM_LIMIT),
    )(xp, vecs, w0, w1, wsq, wcp)
    return out.reshape(b_pad, LOGIT_PAD)[:B, :num_labels]


# ----------------------------------------------------------------------------
# Parameters & plain-JAX reference
# ----------------------------------------------------------------------------

def init_params(key, num_labels):
    ks = jax.random.split(key, 9)
    std = 0.05
    f32 = jnp.float32
    return {
        "g0":  jnp.ones((1, FEAT), f32),
        "be0": jnp.zeros((1, FEAT), f32),
        "w0":  std * jax.random.normal(ks[0], (KSIZE, FEAT, HID), f32),
        "b0":  std * jax.random.normal(ks[1], (1, HID), f32),
        "w1":  std * jax.random.normal(ks[2], (KSIZE, HID, HID), f32),
        "b1":  std * jax.random.normal(ks[3], (1, HID), f32),
        "w2":  std * jax.random.normal(ks[4], (HID, HID), f32),
        "b2":  jnp.zeros((1, HID), f32),
        "g2":  jnp.ones((1, HID), f32),
        "be2": jnp.zeros((1, HID), f32),
        "wq":  std * jax.random.normal(ks[5], (HID, HID), f32),
        "bq":  jnp.zeros((1, HID), f32),
        "wk":  std * jax.random.normal(ks[6], (HID, HID), f32),
        "wv":  std * jax.random.normal(ks[7], (HID, HID), f32),
        "wc":  std * jax.random.normal(ks[8], (HID, num_labels), f32),
        "bc":  jnp.zeros((1, num_labels), f32),
    }


def reference_forward(x, p):
    """Plain-JAX f32 reference mirroring the PyTorch forward (inference)."""
    B, T, _ = x.shape

    def ln(v, g, b):
        mu = v.mean(-1, keepdims=True)
        var = ((v - mu) ** 2).mean(-1, keepdims=True)
        return (v - mu) * jax.lax.rsqrt(var + EPS) * g + b

    h = ln(x, p["g0"], p["be0"])
    hp = jnp.pad(h, ((0, 0), (PAD, PAD), (0, 0)))
    c0 = sum(jnp.einsum("btc,co->bto", hp[:, k:k + T, :], p["w0"][k])
             for k in range(KSIZE)) + p["b0"]
    c0 = jnp.maximum(c0, 0.0)
    cp = jnp.pad(c0, ((0, 0), (PAD, PAD), (0, 0)))
    c1 = sum(jnp.einsum("btc,co->bto", cp[:, k:k + T, :], p["w1"][k])
             for k in range(KSIZE)) + p["b1"]
    c1 = jnp.maximum(c1, 0.0)

    z = c1 @ p["w2"] + p["b2"]
    z = ln(z, p["g2"], p["be2"])
    q = z @ p["wq"] + p["bq"]
    sim = q @ p["wk"]
    attn = jax.nn.softmax(sim, axis=-1)
    v = attn @ p["wv"]
    v = ln(v, p["g2"], p["be2"])
    pooled = v.mean(axis=1)
    return pooled @ p["wc"] + p["bc"]


if __name__ == "__main__":
    B, T, NUM_LABELS = 2, 16, 4
    key = jax.random.PRNGKey(0)
    k_x, k_p = jax.random.split(key)
    x = jax.random.normal(k_x, (B, T, FEAT), jnp.float32)
    params = init_params(k_p, NUM_LABELS)

    logits = voicemail_forward(x, params)
    jax.block_until_ready(logits)

    ref = reference_forward(x, params)
    np.testing.assert_allclose(np.asarray(logits), np.asarray(ref),
                               rtol=3e-2, atol=3e-2)
    print("KERNEL_OK")
</pallas_src>

<mosaic_0001>
module attributes {stable_mosaic.version = 11 : i64} {
  func.func @voicemail_kernel(%arg0: i32, %arg1: memref<1x16x80xf32, #tpu.memory_space<vmem>>, %arg2: memref<16x128xf32, #tpu.memory_space<vmem>>, %arg3: memref<5x80x64xbf16, #tpu.memory_space<vmem>>, %arg4: memref<5x64x64xbf16, #tpu.memory_space<vmem>>, %arg5: memref<4x64x64xbf16, #tpu.memory_space<vmem>>, %arg6: memref<64x128xbf16, #tpu.memory_space<vmem>>, %arg7: memref<1x1x128xf32, #tpu.memory_space<vmem>>) attributes {dimension_semantics = [#tpu.dimension_semantics<parallel>], iteration_bounds = array<i64: 2>, scalar_prefetch = 0 : i64, scratch_operands = 0 : i64, tpu.core_type = #tpu.core_type<tc>, window_params = [{transform_indices = @transform_0, window_bounds = array<i64: 1, 16, 80>}, {pipeline_mode = #tpu.pipeline_mode<synchronous>, transform_indices = @transform_1, window_bounds = array<i64: 16, 128>}, {pipeline_mode = #tpu.pipeline_mode<synchronous>, transform_indices = @transform_2, window_bounds = array<i64: 5, 80, 64>}, {pipeline_mode = #tpu.pipeline_mode<synchronous>, transform_indices = @transform_3, window_bounds = array<i64: 5, 64, 64>}, {pipeline_mode = #tpu.pipeline_mode<synchronous>, transform_indices = @transform_4, window_bounds = array<i64: 4, 64, 64>}, {pipeline_mode = #tpu.pipeline_mode<synchronous>, transform_indices = @transform_5, window_bounds = array<i64: 64, 128>}, {transform_indices = @transform_6, window_bounds = array<i64: 1, 1, 128>}]} {
    %c0 = arith.constant 0 : index
    %c0_0 = arith.constant 0 : index
    %0 = vector.load %arg2[%c0, %c0_0] : memref<16x128xf32, #tpu.memory_space<vmem>>, vector<1x80xf32>
    %c1 = arith.constant 1 : index
    %c0_1 = arith.constant 0 : index
    %1 = vector.load %arg2[%c1, %c0_1] : memref<16x128xf32, #tpu.memory_space<vmem>>, vector<1x80xf32>
    %c2 = arith.constant 2 : index
    %c0_2 = arith.constant 0 : index
    %2 = vector.load %arg2[%c2, %c0_2] : memref<16x128xf32, #tpu.memory_space<vmem>>, vector<1x64xf32>
    %c3 = arith.constant 3 : index
    %c0_3 = arith.constant 0 : index
    %3 = vector.load %arg2[%c3, %c0_3] : memref<16x128xf32, #tpu.memory_space<vmem>>, vector<1x64xf32>
    %c4 = arith.constant 4 : index
    %c0_4 = arith.constant 0 : index
    %4 = vector.load %arg2[%c4, %c0_4] : memref<16x128xf32, #tpu.memory_space<vmem>>, vector<1x64xf32>
    %c5 = arith.constant 5 : index
    %c0_5 = arith.constant 0 : index
    %5 = vector.load %arg2[%c5, %c0_5] : memref<16x128xf32, #tpu.memory_space<vmem>>, vector<1x64xf32>
    %c6 = arith.constant 6 : index
    %c0_6 = arith.constant 0 : index
    %6 = vector.load %arg2[%c6, %c0_6] : memref<16x128xf32, #tpu.memory_space<vmem>>, vector<1x64xf32>
    %c7 = arith.constant 7 : index
    %c0_7 = arith.constant 0 : index
    %7 = vector.load %arg2[%c7, %c0_7] : memref<16x128xf32, #tpu.memory_space<vmem>>, vector<1x64xf32>
    %c8 = arith.constant 8 : index
    %c0_8 = arith.constant 0 : index
    %8 = vector.load %arg2[%c8, %c0_8] : memref<16x128xf32, #tpu.memory_space<vmem>>, vector<1x128xf32>
    %c0_9 = arith.constant 0 : index
    %c0_10 = arith.constant 0 : index
    %c0_11 = arith.constant 0 : index
    %9 = vector.load %arg1[%c0_9, %c0_10, %c0_11] : memref<1x16x80xf32, #tpu.memory_space<vmem>>, vector<1x16x80xf32>
    %10 = vector.shape_cast %9 : vector<1x16x80xf32> to vector<16x80xf32>
    %cst = arith.constant dense<0.000000e+00> : vector<16xf32>
    %11 = vector.multi_reduction <add>, %10, %cst [1] : vector<16x80xf32> to vector<16xf32>
    %12 = vector.shape_cast %11 : vector<16xf32> to vector<16x1xf32>
    %cst_12 = arith.constant 8.000000e+01 : f32
    %13 = vector.broadcast %cst_12 : f32 to vector<16x1xf32>
    %14 = arith.divf %12, %13 : vector<16x1xf32>
    %15 = vector.broadcast %14 : vector<16x1xf32> to vector<16x80xf32>
    %16 = arith.subf %10, %15 : vector<16x80xf32>
    %17 = arith.mulf %16, %16 : vector<16x80xf32>
    %cst_13 = arith.constant dense<0.000000e+00> : vector<16xf32>
    %18 = vector.multi_reduction <add>, %17, %cst_13 [1] : vector<16x80xf32> to vector<16xf32>
    %19 = vector.shape_cast %18 : vector<16xf32> to vector<16x1xf32>
    %cst_14 = arith.constant 8.000000e+01 : f32
    %20 = vector.broadcast %cst_14 : f32 to vector<16x1xf32>
    %21 = arith.divf %19, %20 : vector<16x1xf32>
    %22 = vector.broadcast %14 : vector<16x1xf32> to vector<16x80xf32>
    %23 = arith.subf %10, %22 : vector<16x80xf32>
    %cst_15 = arith.constant 9.99999974E-6 : f32
    %24 = vector.broadcast %cst_15 : f32 to vector<16x1xf32>
    %25 = arith.addf %21, %24 : vector<16x1xf32>
    %26 = math.rsqrt %25 : vector<16x1xf32>
    %27 = vector.broadcast %26 : vector<16x1xf32> to vector<16x80xf32>
    %28 = arith.mulf %23, %27 : vector<16x80xf32>
    %29 = vector.broadcast %0 : vector<1x80xf32> to vector<16x80xf32>
    %30 = arith.mulf %28, %29 : vector<16x80xf32>
    %31 = vector.broadcast %1 : vector<1x80xf32> to vector<16x80xf32>
    %32 = arith.addf %30, %31 : vector<16x80xf32>
    %33 = tpu.iota {dimensions = array<i32: 0>} : vector<16x1xi32>
    %c16_i32 = arith.constant 16 : i32
    %c0_i32 = arith.constant 0 : i32
    %34 = arith.cmpi eq, %c16_i32, %c0_i32 : i32
    %c1_i32 = arith.constant 1 : i32
    %35 = arith.select %34, %c1_i32, %c16_i32 : i32
    %36 = vector.broadcast %35 : i32 to vector<16x1xi32>
    %37 = arith.remsi %33, %36 : vector<16x1xi32>
    %c0_i32_16 = arith.constant 0 : i32
    %38 = vector.broadcast %c0_i32_16 : i32 to vector<16x1xi32>
    %39 = arith.cmpi ne, %37, %38 : vector<16x1xi32>
    %c0_i32_17 = arith.constant 0 : i32
    %40 = vector.broadcast %c0_i32_17 : i32 to vector<16x1xi32>
    %41 = arith.cmpi slt, %37, %40 : vector<16x1xi32>
    %c0_i32_18 = arith.constant 0 : i32
    %42 = arith.cmpi slt, %35, %c0_i32_18 : i32
    %43 = vector.broadcast %42 : i1 to vector<16x1xi1>
    %44 = vector.broadcast %43 : vector<16x1xi1> to vector<16x1xi1>
    %45 = arith.xori %41, %44 : vector<16x1xi1>
    %46 = arith.andi %45, %39 : vector<16x1xi1>
    %47 = vector.broadcast %35 : i32 to vector<16x1xi32>
    %48 = arith.addi %37, %47 : vector<16x1xi32>
    %49 = arith.select %46, %48, %37 : vector<16x1xi1>, vector<16x1xi32>
    %c-2_i32 = arith.constant -2 : i32
    %50 = vector.broadcast %c-2_i32 : i32 to vector<16x1xi32>
    %51 = arith.addi %49, %50 : vector<16x1xi32>
    %c0_i32_19 = arith.constant 0 : i32
    %52 = vector.broadcast %c0_i32_19 : i32 to vector<16x1xi32>
    %53 = arith.cmpi sge, %51, %52 : vector<16x1xi32>
    %c-2_i32_20 = arith.constant -2 : i32
    %54 = vector.broadcast %c-2_i32_20 : i32 to vector<16x1xi32>
    %55 = arith.addi %49, %54 : vector<16x1xi32>
    %c16_i32_21 = arith.constant 16 : i32
    %56 = vector.broadcast %c16_i32_21 : i32 to vector<16x1xi32>
    %57 = arith.cmpi slt, %55, %56 : vector<16x1xi32>
    %58 = arith.andi %53, %57 : vector<16x1xi1>
    %c-1_i32 = arith.constant -1 : i32
    %59 = vector.broadcast %c-1_i32 : i32 to vector<16x1xi32>
    %60 = arith.addi %49, %59 : vector<16x1xi32>
    %c0_i32_22 = arith.constant 0 : i32
    %61 = vector.broadcast %c0_i32_22 : i32 to vector<16x1xi32>
    %62 = arith.cmpi sge, %60, %61 : vector<16x1xi32>
    %c-1_i32_23 = arith.constant -1 : i32
    %63 = vector.broadcast %c-1_i32_23 : i32 to vector<16x1xi32>
    %64 = arith.addi %49, %63 : vector<16x1xi32>
    %c16_i32_24 = arith.constant 16 : i32
    %65 = vector.broadcast %c16_i32_24 : i32 to vector<16x1xi32>
    %66 = arith.cmpi slt, %64, %65 : vector<16x1xi32>
    %67 = arith.andi %62, %66 : vector<16x1xi1>
    %c1_i32_25 = arith.constant 1 : i32
    %68 = vector.broadcast %c1_i32_25 : i32 to vector<16x1xi32>
    %69 = arith.addi %49, %68 : vector<16x1xi32>
    %c0_i32_26 = arith.constant 0 : i32
    %70 = vector.broadcast %c0_i32_26 : i32 to vector<16x1xi32>
    %71 = arith.cmpi sge, %69, %70 : vector<16x1xi32>
    %c1_i32_27 = arith.constant 1 : i32
    %72 = vector.broadcast %c1_i32_27 : i32 to vector<16x1xi32>
    %73 = arith.addi %49, %72 : vector<16x1xi32>
    %c16_i32_28 = arith.constant 16 : i32
    %74 = vector.broadcast %c16_i32_28 : i32 to vector<16x1xi32>
    %75 = arith.cmpi slt, %73, %74 : vector<16x1xi32>
    %76 = arith.andi %71, %75 : vector<16x1xi1>
    %c2_i32 = arith.constant 2 : i32
    %77 = vector.broadcast %c2_i32 : i32 to vector<16x1xi32>
    %78 = arith.addi %49, %77 : vector<16x1xi32>
    %c0_i32_29 = arith.constant 0 : i32
    %79 = vector.broadcast %c0_i32_29 : i32 to vector<16x1xi32>
    %80 = arith.cmpi sge, %78, %79 : vector<16x1xi32>
    %c2_i32_30 = arith.constant 2 : i32
    %81 = vector.broadcast %c2_i32_30 : i32 to vector<16x1xi32>
    %82 = arith.addi %49, %81 : vector<16x1xi32>
    %c16_i32_31 = arith.constant 16 : i32
    %83 = vector.broadcast %c16_i32_31 : i32 to vector<16x1xi32>
    %84 = arith.cmpi slt, %82, %83 : vector<16x1xi32>
    %85 = arith.andi %80, %84 : vector<16x1xi1>
    %c2_i32_32 = arith.constant 2 : i32
    %86 = tpu.dynamic_rotate %32 by %c2_i32_32 dim 0 : vector<16x80xf32>, i32 -> vector<16x80xf32>
    %87 = arith.truncf %86 : vector<16x80xf32> to vector<16x80xbf16>
    %cst_33 = arith.constant 0.000000e+00 : bf16
    %88 = vector.shape_cast %58 : vector<16x1xi1> to vector<16x1xi1>
    %89 = vector.broadcast %88 : vector<16x1xi1> to vector<16x80xi1>
    %90 = vector.broadcast %cst_33 : bf16 to vector<16x80xbf16>
    %91 = arith.select %89, %87, %90 : vector<16x80xi1>, vector<16x80xbf16>
    %c0_34 = arith.constant 0 : index
    %c0_35 = arith.constant 0 : index
    %c0_36 = arith.constant 0 : index
    %92 = vector.load %arg3[%c0_34, %c0_35, %c0_36] : memref<5x80x64xbf16, #tpu.memory_space<vmem>>, vector<1x80x64xbf16>
    %93 = vector.shape_cast %92 : vector<1x80x64xbf16> to vector<80x64xbf16>
    %cst_37 = arith.constant dense<0.000000e+00> : vector<16x64xf32>
    %94 = tpu.matmul %91, %93, %cst_37 {dimension_numbers = #tpu.dot_dimension_numbers<[1], [0], [0], [1], [0, 0, 1, 1], [], []>} : vector<16x80xbf16>, vector<80x64xbf16>, vector<16x64xf32> -> vector<16x64xf32>
    %c1_i32_38 = arith.constant 1 : i32
    %95 = tpu.dynamic_rotate %32 by %c1_i32_38 dim 0 : vector<16x80xf32>, i32 -> vector<16x80xf32>
    %96 = arith.truncf %95 : vector<16x80xf32> to vector<16x80xbf16>
    %cst_39 = arith.constant 0.000000e+00 : bf16
    %97 = vector.shape_cast %67 : vector<16x1xi1> to vector<16x1xi1>
    %98 = vector.broadcast %97 : vector<16x1xi1> to vector<16x80xi1>
    %99 = vector.broadcast %cst_39 : bf16 to vector<16x80xbf16>
    %100 = arith.select %98, %96, %99 : vector<16x80xi1>, vector<16x80xbf16>
    %c1_40 = arith.constant 1 : index
    %c0_41 = arith.constant 0 : index
    %c0_42 = arith.constant 0 : index
    %101 = vector.load %arg3[%c1_40, %c0_41, %c0_42] : memref<5x80x64xbf16, #tpu.memory_space<vmem>>, vector<1x80x64xbf16>
    %102 = vector.shape_cast %101 : vector<1x80x64xbf16> to vector<80x64xbf16>
    %cst_43 = arith.constant dense<0.000000e+00> : vector<16x64xf32>
    %103 = tpu.matmul %100, %102, %cst_43 {dimension_numbers = #tpu.dot_dimension_numbers<[1], [0], [0], [1], [0, 0, 1, 1], [], []>} : vector<16x80xbf16>, vector<80x64xbf16>, vector<16x64xf32> -> vector<16x64xf32>
    %104 = arith.addf %94, %103 : vector<16x64xf32>
    %105 = arith.truncf %32 : vector<16x80xf32> to vector<16x80xbf16>
    %c2_44 = arith.constant 2 : index
    %c0_45 = arith.constant 0 : index
    %c0_46 = arith.constant 0 : index
    %106 = vector.load %arg3[%c2_44, %c0_45, %c0_46] : memref<5x80x64xbf16, #tpu.memory_space<vmem>>, vector<1x80x64xbf16>
    %107 = vector.shape_cast %106 : vector<1x80x64xbf16> to vector<80x64xbf16>
    %cst_47 = arith.constant dense<0.000000e+00> : vector<16x64xf32>
    %108 = tpu.matmul %105, %107, %cst_47 {dimension_numbers = #tpu.dot_dimension_numbers<[1], [0], [0], [1], [0, 0, 1, 1], [], []>} : vector<16x80xbf16>, vector<80x64xbf16>, vector<16x64xf32> -> vector<16x64xf32>
    %109 = arith.addf %104, %108 : vector<16x64xf32>
    %c15_i32 = arith.constant 15 : i32
    %110 = tpu.dynamic_rotate %32 by %c15_i32 dim 0 : vector<16x80xf32>, i32 -> vector<16x80xf32>
    %111 = arith.truncf %110 : vector<16x80xf32> to vector<16x80xbf16>
    %cst_48 = arith.constant 0.000000e+00 : bf16
    %112 = vector.shape_cast %76 : vector<16x1xi1> to vector<16x1xi1>
    %113 = vector.broadcast %112 : vector<16x1xi1> to vector<16x80xi1>
    %114 = vector.broadcast %cst_48 : bf16 to vector<16x80xbf16>
    %115 = arith.select %113, %111, %114 : vector<16x80xi1>, vector<16x80xbf16>
    %c3_49 = arith.constant 3 : index
    %c0_50 = arith.constant 0 : index
    %c0_51 = arith.constant 0 : index
    %116 = vector.load %arg3[%c3_49, %c0_50, %c0_51] : memref<5x80x64xbf16, #tpu.memory_space<vmem>>, vector<1x80x64xbf16>
    %117 = vector.shape_cast %116 : vector<1x80x64xbf16> to vector<80x64xbf16>
    %cst_52 = arith.constant dense<0.000000e+00> : vector<16x64xf32>
    %118 = tpu.matmul %115, %117, %cst_52 {dimension_numbers = #tpu.dot_dimension_numbers<[1], [0], [0], [1], [0, 0, 1, 1], [], []>} : vector<16x80xbf16>, vector<80x64xbf16>, vector<16x64xf32> -> vector<16x64xf32>
    %119 = arith.addf %109, %118 : vector<16x64xf32>
    %c14_i32 = arith.constant 14 : i32
    %120 = tpu.dynamic_rotate %32 by %c14_i32 dim 0 : vector<16x80xf32>, i32 -> vector<16x80xf32>
    %121 = arith.truncf %120 : vector<16x80xf32> to vector<16x80xbf16>
    %cst_53 = arith.constant 0.000000e+00 : bf16
    %122 = vector.shape_cast %85 : vector<16x1xi1> to vector<16x1xi1>
    %123 = vector.broadcast %122 : vector<16x1xi1> to vector<16x80xi1>
    %124 = vector.broadcast %cst_53 : bf16 to vector<16x80xbf16>
    %125 = arith.select %123, %121, %124 : vector<16x80xi1>, vector<16x80xbf16>
    %c4_54 = arith.constant 4 : index
    %c0_55 = arith.constant 0 : index
    %c0_56 = arith.constant 0 : index
    %126 = vector.load %arg3[%c4_54, %c0_55, %c0_56] : memref<5x80x64xbf16, #tpu.memory_space<vmem>>, vector<1x80x64xbf16>
    %127 = vector.shape_cast %126 : vector<1x80x64xbf16> to vector<80x64xbf16>
    %cst_57 = arith.constant dense<0.000000e+00> : vector<16x64xf32>
    %128 = tpu.matmul %125, %127, %cst_57 {dimension_numbers = #tpu.dot_dimension_numbers<[1], [0], [0], [1], [0, 0, 1, 1], [], []>} : vector<16x80xbf16>, vector<80x64xbf16>, vector<16x64xf32> -> vector<16x64xf32>
    %129 = arith.addf %119, %128 : vector<16x64xf32>
    %130 = vector.broadcast %2 : vector<1x64xf32> to vector<16x64xf32>
    %131 = arith.addf %129, %130 : vector<16x64xf32>
    %cst_58 = arith.constant 0.000000e+00 : f32
    %132 = vector.broadcast %cst_58 : f32 to vector<16x64xf32>
    %133 = arith.maximumf %131, %132 : vector<16x64xf32>
    %c2_i32_59 = arith.constant 2 : i32
    %134 = tpu.dynamic_rotate %133 by %c2_i32_59 dim 0 : vector<16x64xf32>, i32 -> vector<16x64xf32>
    %135 = arith.truncf %134 : vector<16x64xf32> to vector<16x64xbf16>
    %cst_60 = arith.constant 0.000000e+00 : bf16
    %136 = vector.shape_cast %58 : vector<16x1xi1> to vector<16x1xi1>
    %137 = vector.broadcast %136 : vector<16x1xi1> to vector<16x64xi1>
    %138 = vector.broadcast %cst_60 : bf16 to vector<16x64xbf16>
    %139 = arith.select %137, %135, %138 : vector<16x64xi1>, vector<16x64xbf16>
    %c0_61 = arith.constant 0 : index
    %c0_62 = arith.constant 0 : index
    %c0_63 = arith.constant 0 : index
    %140 = vector.load %arg4[%c0_61, %c0_62, %c0_63] : memref<5x64x64xbf16, #tpu.memory_space<vmem>>, vector<1x64x64xbf16>
    %141 = vector.shape_cast %140 : vector<1x64x64xbf16> to vector<64x64xbf16>
    %cst_64 = arith.constant dense<0.000000e+00> : vector<16x64xf32>
    %142 = tpu.matmul %139, %141, %cst_64 {dimension_numbers = #tpu.dot_dimension_numbers<[1], [0], [0], [1], [0, 0, 1, 1], [], []>} : vector<16x64xbf16>, vector<64x64xbf16>, vector<16x64xf32> -> vector<16x64xf32>
    %c1_i32_65 = arith.constant 1 : i32
    %143 = tpu.dynamic_rotate %133 by %c1_i32_65 dim 0 : vector<16x64xf32>, i32 -> vector<16x64xf32>
    %144 = arith.truncf %143 : vector<16x64xf32> to vector<16x64xbf16>
    %cst_66 = arith.constant 0.000000e+00 : bf16
    %145 = vector.shape_cast %67 : vector<16x1xi1> to vector<16x1xi1>
    %146 = vector.broadcast %145 : vector<16x1xi1> to vector<16x64xi1>
    %147 = vector.broadcast %cst_66 : bf16 to vector<16x64xbf16>
    %148 = arith.select %146, %144, %147 : vector<16x64xi1>, vector<16x64xbf16>
    %c1_67 = arith.constant 1 : index
    %c0_68 = arith.constant 0 : index
    %c0_69 = arith.constant 0 : index
    %149 = vector.load %arg4[%c1_67, %c0_68, %c0_69] : memref<5x64x64xbf16, #tpu.memory_space<vmem>>, vector<1x64x64xbf16>
    %150 = vector.shape_cast %149 : vector<1x64x64xbf16> to vector<64x64xbf16>
    %cst_70 = arith.constant dense<0.000000e+00> : vector<16x64xf32>
    %151 = tpu.matmul %148, %150, %cst_70 {dimension_numbers = #tpu.dot_dimension_numbers<[1], [0], [0], [1], [0, 0, 1, 1], [], []>} : vector<16x64xbf16>, vector<64x64xbf16>, vector<16x64xf32> -> vector<16x64xf32>
    %152 = arith.addf %142, %151 : vector<16x64xf32>
    %153 = arith.truncf %133 : vector<16x64xf32> to vector<16x64xbf16>
    %c2_71 = arith.constant 2 : index
    %c0_72 = arith.constant 0 : index
    %c0_73 = arith.constant 0 : index
    %154 = vector.load %arg4[%c2_71, %c0_72, %c0_73] : memref<5x64x64xbf16, #tpu.memory_space<vmem>>, vector<1x64x64xbf16>
    %155 = vector.shape_cast %154 : vector<1x64x64xbf16> to vector<64x64xbf16>
    %cst_74 = arith.constant dense<0.000000e+00> : vector<16x64xf32>
    %156 = tpu.matmul %153, %155, %cst_74 {dimension_numbers = #tpu.dot_dimension_numbers<[1], [0], [0], [1], [0, 0, 1, 1], [], []>} : vector<16x64xbf16>, vector<64x64xbf16>, vector<16x64xf32> -> vector<16x64xf32>
    %157 = arith.addf %152, %156 : vector<16x64xf32>
    %c15_i32_75 = arith.constant 15 : i32
    %158 = tpu.dynamic_rotate %133 by %c15_i32_75 dim 0 : vector<16x64xf32>, i32 -> vector<16x64xf32>
    %159 = arith.truncf %158 : vector<16x64xf32> to vector<16x64xbf16>
    %cst_76 = arith.constant 0.000000e+00 : bf16
    %160 = vector.shape_cast %76 : vector<16x1xi1> to vector<16x1xi1>
    %161 = vector.broadcast %160 : vector<16x1xi1> to vector<16x64xi1>
    %162 = vector.broadcast %cst_76 : bf16 to vector<16x64xbf16>
    %163 = arith.select %161, %159, %162 : vector<16x64xi1>, vector<16x64xbf16>
    %c3_77 = arith.constant 3 : index
    %c0_78 = arith.constant 0 : index
    %c0_79 = arith.constant 0 : index
    %164 = vector.load %arg4[%c3_77, %c0_78, %c0_79] : memref<5x64x64xbf16, #tpu.memory_space<vmem>>, vector<1x64x64xbf16>
    %165 = vector.shape_cast %164 : vector<1x64x64xbf16> to vector<64x64xbf16>
    %cst_80 = arith.constant dense<0.000000e+00> : vector<16x64xf32>
    %166 = tpu.matmul %163, %165, %cst_80 {dimension_numbers = #tpu.dot_dimension_numbers<[1], [0], [0], [1], [0, 0, 1, 1], [], []>} : vector<16x64xbf16>, vector<64x64xbf16>, vector<16x64xf32> -> vector<16x64xf32>
    %167 = arith.addf %157, %166 : vector<16x64xf32>
    %c14_i32_81 = arith.constant 14 : i32
    %168 = tpu.dynamic_rotate %133 by %c14_i32_81 dim 0 : vector<16x64xf32>, i32 -> vector<16x64xf32>
    %169 = arith.truncf %168 : vector<16x64xf32> to vector<16x64xbf16>
    %cst_82 = arith.constant 0.000000e+00 : bf16
    %170 = vector.shape_cast %85 : vector<16x1xi1> to vector<16x1xi1>
    %171 = vector.broadcast %170 : vector<16x1xi1> to vector<16x64xi1>
    %172 = vector.broadcast %cst_82 : bf16 to vector<16x64xbf16>
    %173 = arith.select %171, %169, %172 : vector<16x64xi1>, vector<16x64xbf16>
    %c4_83 = arith.constant 4 : index
    %c0_84 = arith.constant 0 : index
    %c0_85 = arith.constant 0 : index
    %174 = vector.load %arg4[%c4_83, %c0_84, %c0_85] : memref<5x64x64xbf16, #tpu.memory_space<vmem>>, vector<1x64x64xbf16>
    %175 = vector.shape_cast %174 : vector<1x64x64xbf16> to vector<64x64xbf16>
    %cst_86 = arith.constant dense<0.000000e+00> : vector<16x64xf32>
    %176 = tpu.matmul %173, %175, %cst_86 {dimension_numbers = #tpu.dot_dimension_numbers<[1], [0], [0], [1], [0, 0, 1, 1], [], []>} : vector<16x64xbf16>, vector<64x64xbf16>, vector<16x64xf32> -> vector<16x64xf32>
    %177 = arith.addf %167, %176 : vector<16x64xf32>
    %178 = vector.broadcast %3 : vector<1x64xf32> to vector<16x64xf32>
    %179 = arith.addf %177, %178 : vector<16x64xf32>
    %cst_87 = arith.constant 0.000000e+00 : f32
    %180 = vector.broadcast %cst_87 : f32 to vector<16x64xf32>
    %181 = arith.maximumf %179, %180 : vector<16x64xf32>
    %c0_88 = arith.constant 0 : index
    %c0_89 = arith.constant 0 : index
    %c0_90 = arith.constant 0 : index
    %182 = vector.load %arg5[%c0_88, %c0_89, %c0_90] : memref<4x64x64xbf16, #tpu.memory_space<vmem>>, vector<1x64x64xbf16>
    %183 = vector.shape_cast %182 : vector<1x64x64xbf16> to vector<64x64xbf16>
    %c1_91 = arith.constant 1 : index
    %c0_92 = arith.constant 0 : index
    %c0_93 = arith.constant 0 : index
    %184 = vector.load %arg5[%c1_91, %c0_92, %c0_93] : memref<4x64x64xbf16, #tpu.memory_space<vmem>>, vector<1x64x64xbf16>
    %185 = vector.shape_cast %184 : vector<1x64x64xbf16> to vector<64x64xbf16>
    %c2_94 = arith.constant 2 : index
    %c0_95 = arith.constant 0 : index
    %c0_96 = arith.constant 0 : index
    %186 = vector.load %arg5[%c2_94, %c0_95, %c0_96] : memref<4x64x64xbf16, #tpu.memory_space<vmem>>, vector<1x64x64xbf16>
    %187 = vector.shape_cast %186 : vector<1x64x64xbf16> to vector<64x64xbf16>
    %c3_97 = arith.constant 3 : index
    %c0_98 = arith.constant 0 : index
    %c0_99 = arith.constant 0 : index
    %188 = vector.load %arg5[%c3_97, %c0_98, %c0_99] : memref<4x64x64xbf16, #tpu.memory_space<vmem>>, vector<1x64x64xbf16>
    %189 = vector.shape_cast %188 : vector<1x64x64xbf16> to vector<64x64xbf16>
    %190 = arith.truncf %181 : vector<16x64xf32> to vector<16x64xbf16>
    %cst_100 = arith.constant dense<0.000000e+00> : vector<16x64xf32>
    %191 = tpu.matmul %190, %183, %cst_100 {dimension_numbers = #tpu.dot_dimension_numbers<[1], [0], [0], [1], [0, 0, 1, 1], [], []>} : vector<16x64xbf16>, vector<64x64xbf16>, vector<16x64xf32> -> vector<16x64xf32>
    %192 = vector.broadcast %4 : vector<1x64xf32> to vector<16x64xf32>
    %193 = arith.addf %191, %192 : vector<16x64xf32>
    %cst_101 = arith.constant dense<0.000000e+00> : vector<16xf32>
    %194 = vector.multi_reduction <add>, %193, %cst_101 [1] : vector<16x64xf32> to vector<16xf32>
    %195 = vector.shape_cast %194 : vector<16xf32> to vector<16x1xf32>
    %cst_102 = arith.constant 6.400000e+01 : f32
    %196 = vector.broadcast %cst_102 : f32 to vector<16x1xf32>
    %197 = arith.divf %195, %196 : vector<16x1xf32>
    %198 = vector.broadcast %197 : vector<16x1xf32> to vector<16x64xf32>
    %199 = arith.subf %193, %198 : vector<16x64xf32>
    %200 = arith.mulf %199, %199 : vector<16x64xf32>
    %cst_103 = arith.constant dense<0.000000e+00> : vector<16xf32>
    %201 = vector.multi_reduction <add>, %200, %cst_103 [1] : vector<16x64xf32> to vector<16xf32>
    %202 = vector.shape_cast %201 : vector<16xf32> to vector<16x1xf32>
    %cst_104 = arith.constant 6.400000e+01 : f32
    %203 = vector.broadcast %cst_104 : f32 to vector<16x1xf32>
    %204 = arith.divf %202, %203 : vector<16x1xf32>
    %205 = vector.broadcast %197 : vector<16x1xf32> to vector<16x64xf32>
    %206 = arith.subf %193, %205 : vector<16x64xf32>
    %cst_105 = arith.constant 9.99999974E-6 : f32
    %207 = vector.broadcast %cst_105 : f32 to vector<16x1xf32>
    %208 = arith.addf %204, %207 : vector<16x1xf32>
    %209 = math.rsqrt %208 : vector<16x1xf32>
    %210 = vector.broadcast %209 : vector<16x1xf32> to vector<16x64xf32>
    %211 = arith.mulf %206, %210 : vector<16x64xf32>
    %212 = vector.broadcast %5 : vector<1x64xf32> to vector<16x64xf32>
    %213 = arith.mulf %211, %212 : vector<16x64xf32>
    %214 = vector.broadcast %6 : vector<1x64xf32> to vector<16x64xf32>
    %215 = arith.addf %213, %214 : vector<16x64xf32>
    %216 = arith.truncf %215 : vector<16x64xf32> to vector<16x64xbf16>
    %cst_106 = arith.constant dense<0.000000e+00> : vector<16x64xf32>
    %217 = tpu.matmul %216, %185, %cst_106 {dimension_numbers = #tpu.dot_dimension_numbers<[1], [0], [0], [1], [0, 0, 1, 1], [], []>} : vector<16x64xbf16>, vector<64x64xbf16>, vector<16x64xf32> -> vector<16x64xf32>
    %218 = vector.broadcast %7 : vector<1x64xf32> to vector<16x64xf32>
    %219 = arith.addf %217, %218 : vector<16x64xf32>
    %220 = arith.truncf %219 : vector<16x64xf32> to vector<16x64xbf16>
    %cst_107 = arith.constant dense<0.000000e+00> : vector<16x64xf32>
    %221 = tpu.matmul %220, %187, %cst_107 {dimension_numbers = #tpu.dot_dimension_numbers<[1], [0], [0], [1], [0, 0, 1, 1], [], []>} : vector<16x64xbf16>, vector<64x64xbf16>, vector<16x64xf32> -> vector<16x64xf32>
    %cst_108 = arith.constant dense<0xFF800000> : vector<16xf32>
    %222 = vector.multi_reduction <maximumf>, %221, %cst_108 [1] : vector<16x64xf32> to vector<16xf32>
    %223 = vector.shape_cast %222 : vector<16xf32> to vector<16x1xf32>
    %224 = vector.broadcast %223 : vector<16x1xf32> to vector<16x64xf32>
    %225 = arith.subf %221, %224 : vector<16x64xf32>
    %226 = math.exp %225 : vector<16x64xf32>
    %cst_109 = arith.constant dense<0.000000e+00> : vector<16xf32>
    %227 = vector.multi_reduction <add>, %226, %cst_109 [1] : vector<16x64xf32> to vector<16xf32>
    %228 = vector.shape_cast %227 : vector<16xf32> to vector<16x1xf32>
    %229 = tpu.reciprocal %228 {approx = true} : vector<16x1xf32> -> vector<16x1xf32>
    %230 = vector.broadcast %229 : vector<16x1xf32> to vector<16x64xf32>
    %231 = arith.mulf %226, %230 : vector<16x64xf32>
    %232 = arith.truncf %231 : vector<16x64xf32> to vector<16x64xbf16>
    %cst_110 = arith.constant dense<0.000000e+00> : vector<16x64xf32>
    %233 = tpu.matmul %232, %189, %cst_110 {dimension_numbers = #tpu.dot_dimension_numbers<[1], [0], [0], [1], [0, 0, 1, 1], [], []>} : vector<16x64xbf16>, vector<64x64xbf16>, vector<16x64xf32> -> vector<16x64xf32>
    %cst_111 = arith.constant dense<0.000000e+00> : vector<16xf32>
    %234 = vector.multi_reduction <add>, %233, %cst_111 [1] : vector<16x64xf32> to vector<16xf32>
    %235 = vector.shape_cast %234 : vector<16xf32> to vector<16x1xf32>
    %cst_112 = arith.constant 6.400000e+01 : f32
    %236 = vector.broadcast %cst_112 : f32 to vector<16x1xf32>
    %237 = arith.divf %235, %236 : vector<16x1xf32>
    %238 = vector.broadcast %237 : vector<16x1xf32> to vector<16x64xf32>
    %239 = arith.subf %233, %238 : vector<16x64xf32>
    %240 = arith.mulf %239, %239 : vector<16x64xf32>
    %cst_113 = arith.constant dense<0.000000e+00> : vector<16xf32>
    %241 = vector.multi_reduction <add>, %240, %cst_113 [1] : vector<16x64xf32> to vector<16xf32>
    %242 = vector.shape_cast %241 : vector<16xf32> to vector<16x1xf32>
    %cst_114 = arith.constant 6.400000e+01 : f32
    %243 = vector.broadcast %cst_114 : f32 to vector<16x1xf32>
    %244 = arith.divf %242, %243 : vector<16x1xf32>
    %245 = vector.broadcast %237 : vector<16x1xf32> to vector<16x64xf32>
    %246 = arith.subf %233, %245 : vector<16x64xf32>
    %cst_115 = arith.constant 9.99999974E-6 : f32
    %247 = vector.broadcast %cst_115 : f32 to vector<16x1xf32>
    %248 = arith.addf %244, %247 : vector<16x1xf32>
    %249 = math.rsqrt %248 : vector<16x1xf32>
    %250 = vector.broadcast %249 : vector<16x1xf32> to vector<16x64xf32>
    %251 = arith.mulf %246, %250 : vector<16x64xf32>
    %252 = vector.broadcast %5 : vector<1x64xf32> to vector<16x64xf32>
    %253 = arith.mulf %251, %252 : vector<16x64xf32>
    %254 = vector.broadcast %6 : vector<1x64xf32> to vector<16x64xf32>
    %255 = arith.addf %253, %254 : vector<16x64xf32>
    %256 = vector.shape_cast %255 : vector<16x64xf32> to vector<1x16x64xf32>
    %cst_116 = arith.constant dense<0.000000e+00> : vector<1x64xf32>
    %257 = vector.multi_reduction <add>, %256, %cst_116 [1] : vector<1x16x64xf32> to vector<1x64xf32>
    %cst_117 = arith.constant 6.250000e-02 : f32
    %258 = vector.broadcast %cst_117 : f32 to vector<1x64xf32>
    %259 = arith.mulf %257, %258 : vector<1x64xf32>
    %260 = arith.truncf %259 : vector<1x64xf32> to vector<1x64xbf16>
    %c0_118 = arith.constant 0 : index
    %c0_119 = arith.constant 0 : index
    %261 = vector.load %arg6[%c0_118, %c0_119] : memref<64x128xbf16, #tpu.memory_space<vmem>>, vector<64x128xbf16>
    %cst_120 = arith.constant dense<0.000000e+00> : vector<1x128xf32>
    %262 = tpu.matmul %260, %261, %cst_120 {dimension_numbers = #tpu.dot_dimension_numbers<[1], [0], [0], [1], [0, 0, 1, 1], [], []>} : vector<1x64xbf16>, vector<64x128xbf16>, vector<1x128xf32> -> vector<1x128xf32>
    %263 = arith.addf %262, %8 : vector<1x128xf32>
    %c0_121 = arith.constant 0 : index
    %c0_122 = arith.constant 0 : index
    %c0_123 = arith.constant 0 : index
    %264 = vector.load %arg7[%c0_121, %c0_122, %c0_123] : memref<1x1x128xf32, #tpu.memory_space<vmem>>, vector<1x1x128xf32>
    %265 = vector.shape_cast %264 : vector<1x1x128xf32> to vector<1x128xf32>
    %266 = vector.shape_cast %263 : vector<1x128xf32> to vector<1x1x128xf32>
    tpu.vector_store %arg7[%c0_121, %c0_122, %c0_123], %266 {strides = array<i32>} : memref<1x1x128xf32, #tpu.memory_space<vmem>>, vector<1x1x128xf32>,
    return
  }
  func.func @transform_0(%arg0: i32) -> (i32, i32, i32) {
    %c0_i32 = arith.constant 0 : i32
    %c0_i32_0 = arith.constant 0 : i32
    %c0_i32_1 = arith.constant 0 : i32
    return %arg0, %c0_i32, %c0_i32_0 : i32, i32, i32
  }
  func.func @transform_1(%arg0: i32) -> (i32, i32) {
    %c0_i32 = arith.constant 0 : i32
    %c0_i32_0 = arith.constant 0 : i32
    %c0_i32_1 = arith.constant 0 : i32
    return %c0_i32, %c0_i32_0 : i32, i32
  }
  func.func @transform_2(%arg0: i32) -> (i32, i32, i32) {
    %c0_i32 = arith.constant 0 : i32
    %c0_i32_0 = arith.constant 0 : i32
    %c0_i32_1 = arith.constant 0 : i32
    %c0_i32_2 = arith.constant 0 : i32
    return %c0_i32, %c0_i32_0, %c0_i32_1 : i32, i32, i32
  }
  func.func @transform_3(%arg0: i32) -> (i32, i32, i32) {
    %c0_i32 = arith.constant 0 : i32
    %c0_i32_0 = arith.constant 0 : i32
    %c0_i32_1 = arith.constant 0 : i32
    %c0_i32_2 = arith.constant 0 : i32
    return %c0_i32, %c0_i32_0, %c0_i32_1 : i32, i32, i32
  }
  func.func @transform_4(%arg0: i32) -> (i32, i32, i32) {
    %c0_i32 = arith.constant 0 : i32
    %c0_i32_0 = arith.constant 0 : i32
    %c0_i32_1 = arith.constant 0 : i32
    %c0_i32_2 = arith.constant 0 : i32
    return %c0_i32, %c0_i32_0, %c0_i32_1 : i32, i32, i32
  }
  func.func @transform_5(%arg0: i32) -> (i32, i32) {
    %c0_i32 = arith.constant 0 : i32
    %c0_i32_0 = arith.constant 0 : i32
    %c0_i32_1 = arith.constant 0 : i32
    return %c0_i32, %c0_i32_0 : i32, i32
  }
  func.func @transform_6(%arg0: i32) -> (i32, i32, i32) {
    %c0_i32 = arith.constant 0 : i32
    %c0_i32_0 = arith.constant 0 : i32
    %c0_i32_1 = arith.constant 0 : i32
    return %arg0, %c0_i32, %c0_i32_0 : i32, i32, i32
  }
}

</mosaic_0001>

<bundles_post_ra>
// kernel: tpu_custom_call.1
= control target key start
LH: loop header
LB: loop body
LE: loop exit
PB: predicated region body
PF: predicated region fallthrough
CT: control target
= control target key end

     0   :  { %11 = vsyncpa [#allocation3], 0  ;;  %s3215_s0 = inlined_call_operand.vmem [shape: f32[2,16,80], index: 0, kind: input, shape index: {}]   ;;  %s3216_s1 = inlined_call_operand.hbm [shape: f32[16,128], index: 1, kind: input, shape index: {}]   ;;  %s3217_s2 = inlined_call_operand.vmem [shape: bf16[5,80,64], index: 2, kind: input, shape index: {}]   ;;  %s3218_s3 = inlined_call_operand.vmem [shape: bf16[5,64,64], index: 3, kind: input, shape index: {}]   ;;  %s3219_s4 = inlined_call_operand.vmem [shape: bf16[4,64,64], index: 4, kind: input, shape index: {}]   ;;  %s3220_s5 = inlined_call_operand.vmem [shape: bf16[64,128], index: 5, kind: input, shape index: {}]   ;;  %s3221_s6 = inlined_call_operand.hbm [shape: f32[2,1,128], index: 6, kind: output, shape index: {}]  }
   0x1   :  { %12 = vsyncpa [#allocation4], 0 }
   0x2   :  { %14 = vsyncpa [#allocation4 + $0x1], 0  ;;  %s2639_s21 = smov 0   ;;  %s2641_s22 = smov 0  }
   0x3   :  { %s2643_s23 = smov 0   ;;  %s2645_s24 = smov 0  }
   0x4 LB: > { %s2660_s25 = sadd.s32 4294967295, %s2594_s24   ;;  %s1893_s26 = sadd.s32 4294967294, %s2594_s24   ;;  %s2594_s24 = sphi %s2645_s24, %s3237_s24   ;;  %s2590_s23 = sphi %s2643_s23, %s3236_s23   ;;  %s2586_s22 = sphi %s2641_s22, %s3235_s22   ;;  %s2582_s21 = sphi %s2639_s21, %s3234_s21  }
   0x5   : > { %s2664_s27 = sadd.s32 1, %s2594_s24   ;;  %s158_s28 = sadd.s32 1, %s2590_s23 }
   0x6   : > { %s155_s29 = ssub.s32 %s2594_s24, %s2664_s27  ;;  %p168_p0 = scmp.ne.s32.totalorder %s2590_s23, %s2586_s22 }
   0x7   : > { %p156_p1 = scmp.eq.s32.totalorder %s155_s29, 0  ;;  %p169_p2 = scmp.eq.s32.totalorder %s2660_s25, 1 }
   0x8   : > { %p174_p3 = scmp.ne.s32.totalorder %s2586_s22, %s2582_s21  ;;  %p175_p4 = scmp.eq.s32.totalorder %s1893_s26, 1 }
   0x9   : > { %s2675_s30 = scalar_select %p156_p1, %s2590_s23, %s158_s28  }
   0xa   : > { %p2677_p5 = por %p169_p2, %p168_p0  ;;  %p2681_p6 = por %p175_p4, %p174_p3 }
   0xb   : > { %p1894_p7 = scmp.ge.s32.totalorder %s2594_s24, 1  ;;  %p182_p8 = scmp.lt.s32.totalorder %s2594_s24, 3 }
   0xc   : > { %s3223_s8 = scalar_select %p2681_p6, 1, 0 }
   0xd   : > { %p2377_p9 = scmp.eq.s32.totalorder %s2660_s25, 0  ;;  %p2688_p10 = pnand %p1894_p7, %p182_p8 }
   0xe   : > { %s2596_s10 = smov [#allocation2]  }
   0xf   : > { %s194_s11 = sshll.u32 %s2596_s10, 4  ;;  %p2369_p11 = pneg %p2688_p10  ;;  %s195_s11 = int_to_ptr.vmem [resolvable:$true] %s194_s11 }
  0x10   : > { %s2515_s12 = scalar_lea.vmem %s195_s11, 256  ;;  %p2523_p3 = scmp.lt.s32.totalorder %s195_s11, %s195_s11 }
  0x11   : > { %p2370_p12 = pnand %p2377_p9, %p2369_p11  ;;  %p2516_p0 = scmp.ne.s32.totalorder %s195_s11, %s2515_s12 }
  0x12   : > { %p2524_p4 = scmp.lt.s32.totalorder %s2515_s12, %s2515_s12 }
  0x13   : > { %p2506_p13 = pneg %p2370_p12 }
  0x14   : > { %p2525_p6 = por %p2524_p4, %p2523_p3 }
  0x15   : > { %p2518_p1 = pnand %p2516_p0, %p2506_p13 }
  0x17   : > { %p2519_p2 = pneg %p2518_p1 }
  0x19   : > { %p2526_p7 = pnand %p2525_p6, %p2519_p2 }
  0x1b   : > { %2529 = shalt.err (!%p2526_p7)
}
  0x1c   : > { %s2597_s13 = smov 128   ;;  %s2598_s14 = smov 8  }
  0x1d   : > { %2372 = dma.hbm_to_vmem [thread:$0]  (!%p2370_p12), %s3216_s1, 256, %s195_s11, [#allocation3], %s2597_s13, %s2597_s13, %s2598_s14  }
  0x1e   : > { %230 = sbr.rel (%p2688_p10) target bundleno = 2803 (0xaf3), region = 44 }
  0x23   : > { %2573 = dma.done.wait (%p2377_p9), [#allocation3], 256  }
  0x24   : > { %2575 = vsyncadd (%p2377_p9), [#allocation3], 4294967040  ;;  %p259_p8 = scmp.lt.s32.totalorder %s2660_s25, 1  ;;  %vm278_vm0 = vcmask 654336   ;;  %v2419_v14 = vld [vmem:[%s3217_s2 + $0x48] sm:$0xff]   ;;  %v2420_v15 = vld [vmem:[%s3217_s2 + $0x20] sm:$0xff]   ;;  %v318_v27 = vlaneseq }
  0x25   : > { %v2599_v16 = vmov 0.0   ;;  %v2421_v17 = vld [vmem:[%s3217_s2 + $0x40] sm:$0xff]   ;;  %v2422_v18 = vld [vmem:[%s3217_s2 + $0x18] sm:$0xff]   ;;  %v2424_v20 = vld [vmem:[%s3217_s2 + $0x10] sm:$0xff]   ;;  %vm2600_vm1 = vmmov 0   ;;  %vm2601_vm4 = vmmov 1  }
  0x26   : > { %s260_s17 = scalar_select %p259_p8, %s2660_s25, 1  ;;  %2173 = vmatprep.subr.bf16.mxu0 %v2599_v16  ;;  %2187 = vmatprep.subr.bf16.mxu1 %v2599_v16  ;;  %v2423_v19 = vld [vmem:[%s3217_s2 + $0x38] sm:$0xff]   ;;  %v2425_v21 = vld [vmem:[%s3217_s2 + $0x30] sm:$0xff]   ;;  %v2426_v22 = vld [vmem:[%s3217_s2 + $0x8] sm:$0xff]   ;;  %v2768_v31 = vshrl.u32 %v318_v27, 7  ;;  %v2602_v43 = vmov 0  }
  0x27   : > { %2174 = vmatpush3.bf16.msra.mxu0 %v2419_v14  ;;  %2188 = vmatpush3.bf16.msra.mxu1 %v2420_v15  ;;  %v2427_v23 = vld [vmem:[%s3217_s2 + $0x28] sm:$0xff]   ;;  %v2428_v24 = vld [vmem:[%s3217_s2] sm:$0xff]   ;;  %vm388_vm5 = vmpackc.low %vm2601_vm4, %vm2601_vm4 }
  0x28   : > { %s2092_s18 = sshll.u32 %s260_s17, 4  ;;  %2175 = vmatprep.subr.bf16.mxu0 %v2599_v16  ;;  %2189 = vmatprep.subr.bf16.mxu1 %v2599_v16  ;;  %v325_v33 = vand.u32 15, %v2768_v31  ;;  %v1901_v37 = vld [vmem:[#allocation2] ss:$0 sm:$0xff]  ;;  %v1902_v41 = vld [vmem:[#allocation2 + $0x1] ss:$0 sm:$0xff] }
  0x29   : > { %s263_s26 = scalar_lea.vmem %s3215_s0, %s2092_s18  ;;  %2183 = vmatprep.mubr.msk.bf16.mxu0 %vm2600_vm1, %v2599_v16  ;;  %2197 = vmatprep.mubr.msk.bf16.mxu1 %vm2600_vm1, %v2599_v16  ;;  %v2774_v44 = vsel %vm388_vm5, 65537, %v2602_v43  ;;  %v2783_v51 = vadd.s32 8, %v2768_v31  ;;  %vm408_vm8 = vcmp.lt.s32.totalorder %v2768_v31, 1  ;;  %vm379_vm9 = vcmp.lt.s32.totalorder %v2768_v31, 2  ;;  %v2462_v58 = vld [vmem:[%s3218_s3 + $0x68] sm:$0xff]   ;;  %s257_s17 = sand.u32 1, %s2586_s22  }
  0x2a   : > { %v276_v0 = vld [vmem:[%s263_s26] sm:$0xff]  ;;  %v277_v1 = vld [vmem:[%s263_s26 + $0x8] sm:$0xff]  ;;  %v353_v34 = vadd.s32 4294967295, %v325_v33  ;;  %v345_v35 = vadd.s32 4294967294, %v325_v33  ;;  %vm674_vm14 = vcmp.lt.s32.totalorder %v2768_v31, 7  ;;  %vm780_vm4 = vcmp.lt.s32.totalorder %v2768_v31, 6 }
  0x2b   : > { %v279_v2 = vsel %vm278_vm0, %v276_v0, 0.0  ;;  %v282_v3 = vsel %vm278_vm0, %v277_v1, 0.0  ;;  %2176 = vmatpush3.bf16.msra.mxu0 %v2421_v17  ;;  %2190 = vmatpush3.bf16.msra.mxu1 %v2422_v18  ;;  %v332_v59 = vand.u32 15, %v2783_v51  ;;  %v2464_v31 = vld [vmem:[%s3219_s4 + $0x18] sm:$0xff]   ;;  %s2089_s18 = sshll.u32 %s2660_s25, 4  ;;  %s258_s19 = scalar_lea.vmem [#allocation5], %s257_s17 }
  0x2c   : > { %280 = vadd.xlane.f32.xlu0 %v279_v2  ;;  %2177 = vmatprep.subr.bf16.mxu0 %v2599_v16  ;;  %vm355_vm2 = vcmp.ge.s32.totalorder %v353_v34, 0  ;;  %vm347_vm3 = vcmp.ge.s32.totalorder %v345_v35, 0  ;;  %v2429_v2 = vld [vmem:[%s3217_s2 + $0x70] sm:$0xff]   ;;  %s1826_s20 = sshll.u32 %s258_s19, 4  ;;  %s3174_s29 = scalar_lea.hbm %s3221_s6, %s2089_s18  ;;  %s3176_s20 = int_to_ptr.vmem [resolvable:$true] %s1826_s20 }
  0x2d   : > { %2191 = vmatprep.subr.bf16.mxu1 %v2599_v16  ;;  %vm416_vm6 = vmpackc.low %vm355_vm2, %vm355_vm2  ;;  %v370_v27 = vadd.s32 2, %v332_v59  ;;  %s1814_s9 = scalar_lea.sflag [#allocation4], %s257_s17  ;;  %s2530_s10 = scalar_lea.vmem %s3176_s20, 16 }
  0x2e   : > { %vm387_vm7 = vmpackc.low %vm347_vm3, %vm347_vm3  ;;  %v418_v45 = vsel %vm416_vm6, 65537, %v2602_v43  ;;  %p2531_p6 = scmp.ne.s32.totalorder %s3176_s20, %s2530_s10  ;;  %s2603_s25 = smov [#allocation5]  }
  0x2f   : > { %2178 = vmatpush3.bf16.msra.mxu0 %v2423_v19  ;;  %2192 = vmatpush3.bf16.msra.mxu1 %v2424_v20  ;;  %v389_v46 = vsel %vm387_vm7, 65537, %v2602_v43  ;;  %v1904_v49 = vcombine.low %v418_v45, %v2774_v44  ;;  %v2437_v20 = vld [vmem:[%s3217_s2 + $0x50] sm:$0xff]   ;;  %vm374_vm2 = vcmp.lt.s32.totalorder %v370_v27, 16  ;;  %s2534_s11 = sshll.u32 %s2603_s25, 4  ;;  %s2535_s11 = int_to_ptr.vmem [resolvable:$false] %s2534_s11 }
  0x30   : > { %283 = vadd.xlane.f32.xlu0 %v282_v3  ;;  %2179 = vmatprep.subr.bf16.mxu0 %v2599_v16  ;;  %v1903_v50 = vcombine.low %v389_v46, %v2774_v44  ;;  %v2430_v3 = vld [vmem:[%s3217_s2 + $0x98] sm:$0xff]   ;;  %vm789_vm3 = vmpackc.low %vm374_vm2, %vm374_vm2  ;;  %v2447_v45 = vld [vmem:[%s3218_s3 + $0x30] sm:$0xff]   ;;  %p2532_p9 = pnand %p2531_p6, %p2677_p5  ;;  %s2536_s12 = scalar_lea.vmem %s2535_s11, 32 }
  0x31   : > { %2193 = vmatprep.subr.bf16.mxu1 %v2599_v16  ;;  %vm2793_vm10 = vcmp.ne.s16.totalorder %v1904_v49, 0  ;;  %v791_v33 = vsel %vm789_vm3, 65537, %v2602_v43  ;;  %v2448_v46 = vld [vmem:[%s3218_s3 + $0x48] sm:$0xff]   ;;  %v2451_v49 = vld [vmem:[%s3218_s3 + $0x20] sm:$0xff]   ;;  %p2537_p11 = scmp.lt.s32.totalorder %s3176_s20, %s2535_s11  ;;  %p2538_p12 = scmp.lt.s32.totalorder %s2536_s12, %s2530_s10 }
  0x32   : > { %vm2797_vm11 = vcmp.ne.s16.totalorder %v1903_v50, 0  ;;  %p2533_p10 = pneg %p2532_p9 }
  0x33   : > { %2180 = vmatpush3.bf16.msra.mxu0 %v2425_v21  ;;  %2194 = vmatpush3.bf16.msra.mxu1 %v2426_v22  ;;  %v2438_v21 = vld [vmem:[%s3217_s2 + $0x78] sm:$0xff]   ;;  %p2539_p13 = por %p2538_p12, %p2537_p11 }
  0x34   : > { %2181 = vmatprep.subr.bf16.mxu0 %v2599_v16  ;;  %2195 = vmatprep.subr.bf16.mxu1 %v2599_v16 }
  0x35   : > { %p2540_p0 = pnand %p2539_p13, %p2533_p10 }
  0x37   : > { %2182 = vmatpush3.bf16.msra.mxu0 %v2427_v23  ;;  %2196 = vmatpush3.bf16.msra.mxu1 %v2428_v24  ;;  %v2439_v24 = vld [vmem:[%s3217_s2 + $0xc0] sm:$0xff]   ;;  %v2466_v23 = vld [vmem:[%s3219_s4 + $0x8] sm:$0xff]  }
  0x38   : > { %2201 = vmatprep.subr.bf16.mxu0 %v2599_v16  ;;  %2215 = vmatprep.subr.bf16.mxu1 %v2599_v16 }
  0xb5   : > { %v281_v4 = vpop.xlane.xlu0 %280 }
  0xb6   : > { %v286_v5 = vmul.f32 0.0125, %v281_v4 }
  0xb8   : > { %v2712_v6 = vsub.f32 %v276_v0, %v286_v5 }
  0xb9   : > { %v284_v7 = vpop.xlane.xlu0 %283 }
  0xba   : > { %v287_v8 = vmul.f32 0.0125, %v284_v7  ;;  %v290_v9 = vmul.f32 %v2712_v6, %v2712_v6  ;;  %v2431_v7 = vld [vmem:[%s3217_s2 + $0x68] sm:$0xff]  }
  0xbc   : > { %v2716_v10 = vsub.f32 %v277_v1, %v287_v8  ;;  %v292_v11 = vsel %vm278_vm0, %v290_v9, 0.0  ;;  %v2432_v8 = vld [vmem:[%s3217_s2 + $0x90] sm:$0xff]   ;;  %v2433_v9 = vld [vmem:[%s3217_s2 + $0x60] sm:$0xff]  }
  0xbd   : > { %293 = vadd.xlane.f32.xlu1 %v292_v11 }
  0xbe   : > { %v291_v12 = vmul.f32 %v2716_v10, %v2716_v10 }
  0xc0   : > { %v295_v13 = vsel %vm278_vm0, %v291_v12, 0.0  ;;  %v2435_v12 = vld [vmem:[%s3217_s2 + $0x58] sm:$0xff]  }
  0xc1   : > { %296 = vadd.xlane.f32.xlu1 %v295_v13  ;;  %v2436_v13 = vld [vmem:[%s3217_s2 + $0x80] sm:$0xff]  }
 0x146   : > { %v294_v25 = vpop.xlane.xlu1 %293 }
 0x147   : > { %v298_v26 = vmul.f32 0.0125, %v294_v25 }
 0x149   : > { %v300_v28 = vadd.f32 1e-05, %v298_v26 }
 0x14a   : > { %v297_v29 = vpop.xlane.xlu1 %296 }
 0x14b   : > { %2484 = vrsqrt.f32 %v300_v28  ;;  %v299_v30 = vmul.f32 0.0125, %v297_v29  ;;  %v2440_v28 = vld [vmem:[%s3217_s2 + $0xb8] sm:$0xff]   ;;  %v2441_v29 = vld [vmem:[%s3217_s2 + $0xb0] sm:$0xff]  }
 0x14d   : > { %v301_v32 = vadd.f32 1e-05, %v299_v30 }
 0x14f   : > { %2486 = vrsqrt.f32 %v301_v32  ;;  %v2442_v32 = vld [vmem:[%s3217_s2 + $0xa8] sm:$0xff]  }
 0x158   : > { %v2485_v36 = vpop.eup %2484 }
 0x159   : > { %v304_v38 = vmul.f32 %v2485_v36, %v2712_v6  ;;  %v362_v6 = vadd.s32 1, %v332_v59 }
 0x15b   : > { %v310_v39 = vmul.f32 %v1901_v37, %v304_v38  ;;  %vm366_vm12 = vcmp.lt.s32.totalorder %v362_v6, 16  ;;  %v2443_v38 = vld [vmem:[%s3217_s2 + $0xa0] sm:$0xff]  }
 0x15c   : > { %v2487_v40 = vpop.eup %2486  ;;  %vm683_vm13 = vmpackc.low %vm366_vm12, %vm366_vm12 }
 0x15d   : > { %v305_v42 = vmul.f32 %v2487_v40, %v2716_v10  ;;  %v2778_v47 = vadd.f32 %v1902_v41, %v310_v39  ;;  %v2434_v10 = vld [vmem:[%s3217_s2 + $0x88] sm:$0xff]   ;;  %v685_v14 = vsel %vm683_vm13, 65537, %v2602_v43  ;;  %v2445_v43 = vld [vmem:[%s3218_s3 + $0x38] sm:$0xff]   ;;  %v2461_v40 = vld [vmem:[%s3218_s3 + $0x70] sm:$0xff]  }
 0x15e   : > { %v1943_v19 = vcombine.low %v2774_v44, %v685_v14 }
 0x15f   : > { %v311_v48 = vmul.f32 %v1901_v37, %v305_v42  ;;  %v406_v53 = vrot.slane %v2778_v47, 7  ;;  %v377_v55 = vrot.slane %v2778_v47, 6  ;;  %v672_v15 = vrot.slane %v2778_v47, 1  ;;  %v2444_v42 = vld [vmem:[%s3218_s3 + $0x58] sm:$0xff]  }
 0x160   : > { %vm2867_vm15 = vcmp.ne.s16.totalorder %v1943_v19, 0  ;;  %v778_v34 = vrot.slane %v2778_v47, 2  ;;  %v1960_v37 = vcombine.low %v2774_v44, %v791_v33  ;;  %v2446_v44 = vld [vmem:[%s3218_s3 + $0x50] sm:$0xff]  }
 0x161   : > { %v2785_v52 = vadd.f32 %v1902_v41, %v311_v48  ;;  %v2450_v48 = vld [vmem:[%s3218_s3 + $0x40] sm:$0xff]  }
 0x162   : > { %vm2911_vm5 = vcmp.ne.s16.totalorder %v1960_v37, 0 }
 0x163   : > { %v407_v54 = vrot.slane %v2785_v52, 7  ;;  %v378_v56 = vrot.slane %v2785_v52, 6  ;;  %v673_v11 = vrot.slane %v2785_v52, 1  ;;  %v584_v25 = vpack.c.bf16 %v2785_v52, %v2778_v47  ;;  %v2449_v47 = vld [vmem:[%s3218_s3 + $0x28] sm:$0xff]  }
 0x164   : > { %v779_v30 = vrot.slane %v2785_v52, 2 }
 0x165   : > { %v409_v60 = vsel %vm408_vm8, %v406_v53, %v407_v54  ;;  %v410_v61 = vsel %vm408_vm8, %v407_v54, %v406_v53  ;;  %v380_v62 = vsel %vm379_vm9, %v377_v55, %v378_v56  ;;  %v381_v63 = vsel %vm379_vm9, %v378_v56, %v377_v55 }
 0x166   : > { %v411_v0 = vpack.c.bf16 %v409_v60, %v410_v61  ;;  %v382_v1 = vpack.c.bf16 %v380_v62, %v381_v63  ;;  %v675_v17 = vsel %vm674_vm14, %v672_v15, %v673_v11  ;;  %v676_v18 = vsel %vm674_vm14, %v673_v11, %v672_v15 }
 0x167   : > { %v677_v22 = vpack.c.bf16 %v676_v18, %v675_v17  ;;  %v781_v35 = vsel %vm780_vm4, %v778_v34, %v779_v30  ;;  %v782_v36 = vsel %vm780_vm4, %v779_v30, %v778_v34  ;;  %v2453_v30 = vld [vmem:[%s3218_s3 + $0x18] sm:$0xff]  }
 0x168   : > { %v424_v4 = vsel %vm2793_vm10, %v411_v0, 0  ;;  %v395_v5 = vsel %vm2797_vm11, %v382_v1, 0  ;;  %v783_v39 = vpack.c.bf16 %v782_v36, %v781_v35  ;;  %v2455_v35 = vld [vmem:[%s3218_s3 + $0x10] sm:$0xff]   ;;  %v2456_v36 = vld [vmem:[%s3218_s3 + $0x88] sm:$0xff]  }
 0x169   : > { %2184 = vmatmul.mubr.msk.bf16.vlgmr.msra.gmra.mxu0 %vm278_vm0, %v424_v4  ;;  %2198 = vmatmul.mubr.msk.bf16.vlgmr.msra.gmra.mxu1 %vm278_vm0, %v395_v5  ;;  %v690_v26 = vsel %vm2867_vm15, %v677_v22, 0  ;;  %v2452_v22 = vld [vmem:[%s3218_s3 + $0x98] sm:$0xff]  }
 0x16a   : > { %2202 = vmatpush3.bf16.msra.mxu0 %v2429_v2  ;;  %2216 = vmatpush3.bf16.msra.mxu1 %v2430_v3  ;;  %v796_v41 = vsel %vm2911_vm5, %v783_v39, 0 }
 0x16b   : > { %2203 = vmatprep.subr.bf16.mxu0 %v2599_v16  ;;  %2217 = vmatprep.subr.bf16.mxu1 %v2599_v16 }
 0x16c   : > { %2211 = vmatprep.mubr.msk.bf16.mxu0 %vm2600_vm1, %v2599_v16  ;;  %2225 = vmatprep.mubr.msk.bf16.mxu1 %vm2600_vm1, %v2599_v16 }
 0x16e   : > { %2204 = vmatpush3.bf16.msra.mxu0 %v2431_v7  ;;  %2218 = vmatpush3.bf16.msra.mxu1 %v2432_v8 }
 0x16f   : > { %2205 = vmatprep.subr.bf16.mxu0 %v2599_v16  ;;  %2219 = vmatprep.subr.bf16.mxu1 %v2599_v16 }
 0x172   : > { %2206 = vmatpush3.bf16.msra.mxu0 %v2433_v9  ;;  %2220 = vmatpush3.bf16.msra.mxu1 %v2434_v10  ;;  %v1977_v9 = vld [vmem:[#allocation2 + $0x2] ss:$0 sm:$0xff] }
 0x173   : > { %2207 = vmatprep.subr.bf16.mxu0 %v2599_v16  ;;  %2221 = vmatprep.subr.bf16.mxu1 %v2599_v16 }
 0x176   : > { %2208 = vmatpush3.bf16.msra.mxu0 %v2435_v12  ;;  %2222 = vmatpush3.bf16.msra.mxu1 %v2436_v13 }
 0x177   : > { %2209 = vmatprep.subr.bf16.mxu0 %v2599_v16  ;;  %2223 = vmatprep.subr.bf16.mxu1 %v2599_v16 }
 0x17a   : > { %2210 = vmatpush3.bf16.msra.mxu0 %v2437_v20  ;;  %2224 = vmatpush3.bf16.msra.mxu1 %v2438_v21 }
 0x17b   : > { %2229 = vmatprep.subr.bf16.mxu0 %v2599_v16  ;;  %2243 = vmatprep.subr.bf16.mxu1 %v2599_v16 }
 0x17d   : > { %2212 = vmatmul.mubr.msk.bf16.vlgmr.msra.gmra.mxu0 %vm278_vm0, %v584_v25  ;;  %2226 = vmatmul.mubr.msk.bf16.vlgmr.msra.gmra.mxu1 %vm278_vm0, %v690_v26 }
 0x17e   : > { %2230 = vmatpush3.bf16.msra.mxu0 %v2439_v24  ;;  %2239 = vmatprep.mubr.msk.bf16.mxu0 %vm2600_vm1, %v2599_v16 }
 0x17f   : > { %2231 = vmatprep.subr.bf16.mxu0 %v2599_v16  ;;  %2251 = vmatprep.mubr.msk.bf16.mxu1 %vm2600_vm1, %v2599_v16 }
 0x180   : > { %2244 = vmatpush3.bf16.msra.mxu1 %v2445_v43 }
 0x181   : > { %2245 = vmatprep.subr.bf16.mxu1 %v2599_v16 }
 0x182   : > { %2232 = vmatpush3.bf16.msra.mxu0 %v2440_v28 }
 0x183   : > { %2233 = vmatprep.subr.bf16.mxu0 %v2599_v16 }
 0x184   : > { %2246 = vmatpush3.bf16.msra.mxu1 %v2447_v45 }
 0x185   : > { %2247 = vmatprep.subr.bf16.mxu1 %v2599_v16 }
 0x186   : > { %2234 = vmatpush3.bf16.msra.mxu0 %v2441_v29 }
 0x187   : > { %2235 = vmatprep.subr.bf16.mxu0 %v2599_v16 }
 0x188   : > { %2248 = vmatpush3.bf16.msra.mxu1 %v2449_v47  ;;  %v2459_v47 = vld [vmem:[%s3218_s3] sm:$0xff]  }
 0x189   : > { %2249 = vmatprep.subr.bf16.mxu1 %v2599_v16 }
 0x18a   : > { %2236 = vmatpush3.bf16.msra.mxu0 %v2442_v32  ;;  %v2454_v32 = vld [vmem:[%s3218_s3 + $0x90] sm:$0xff]  }
 0x18b   : > { %2237 = vmatprep.subr.bf16.mxu0 %v2599_v16 }
 0x18c   : > { %2250 = vmatpush3.bf16.msra.mxu1 %v2451_v49 }
 0x18d   : > { %2255 = vmatprep.subr.bf16.mxu1 %v2599_v16 }
 0x18e   : > { %2238 = vmatpush3.bf16.msra.mxu0 %v2443_v38 }
 0x18f   : > { %2267 = vmatprep.subr.bf16.mxu0 %v2599_v16 }
 0x191   : > { %2240 = vmatmul.mubr.msk.bf16.vlgmr.msra.gmra.mxu0 %vm278_vm0, %v796_v41  ;;  %vm945_vm0 = vcmask 523264   ;;  %v2457_v41 = vld [vmem:[%s3218_s3 + $0x8] sm:$0xff]  }
 0x192   : > { %2275 = vmatprep.mubr.msk.bf16.mxu0 %vm2600_vm1, %v2599_v16  ;;  %2268 = vmatpush3.bf16.msra.mxu0 %v2444_v42  ;;  %v2458_v42 = vld [vmem:[%s3218_s3 + $0x80] sm:$0xff]  }
 0x193   : > { %2269 = vmatprep.subr.bf16.mxu0 %v2599_v16 }
 0x196   : > { %2270 = vmatpush3.bf16.msra.mxu0 %v2446_v44 }
 0x197   : > { %2271 = vmatprep.subr.bf16.mxu0 %v2599_v16 }
 0x19a   : > { %2272 = vmatpush3.bf16.msra.mxu0 %v2448_v46 }
 0x19b   : > { %2273 = vmatprep.subr.bf16.mxu0 %v2599_v16 }
 0x19e   : > { %2274 = vmatpush3.bf16.msra.mxu0 %v2450_v48 }
 0x19f   : > { %2291 = vmatprep.subr.bf16.mxu0 %v2599_v16 }
 0x229   : > { %v503_v50 = vpop.f32.mrf.mxu0  ;;  %v577_v51 = vpop.f32.mrf.mxu1 }
 0x22a   : > { %v578_v4 = vadd.f32 %v577_v51, %v503_v50  ;;  %v2460_v50 = vld [vmem:[%s3218_s3 + $0x78] sm:$0xff]  }
 0x22b   : > { %v2185_v52 = vpop.f32.mrf.mxu0  ;;  %v2199_v53 = vpop.f32.mrf.mxu1 }
 0x22d   : > { %v506_v54 = vpop.f32.mrf.mxu0  ;;  %v580_v55 = vpop.f32.mrf.mxu1 }
 0x22e   : > { %v581_v6 = vadd.f32 %v580_v55, %v506_v54 }
 0x22f   : > { %v2186_v56 = vpop.f32.mrf.mxu0  ;;  %v2200_v59 = vpop.f32.mrf.mxu1 }
 0x230   : > { %v2463_v56 = vld [vmem:[%s3218_s3 + $0x60] sm:$0xff]  }
 0x23d   : > { %v663_v60 = vpop.f32.mrf.mxu0  ;;  %v769_v61 = vpop.f32.mrf.mxu1 }
 0x23e   : > { %v670_v5 = vadd.f32 %v663_v60, %v578_v4 }
 0x23f   : > { %v2213_v62 = vpop.f32.mrf.mxu0  ;;  %v2227_v63 = vpop.f32.mrf.mxu1 }
 0x240   : > { %v776_v7 = vadd.f32 %v769_v61, %v670_v5  ;;  %v2465_v61 = vld [vmem:[%s3219_s4 + $0x10] sm:$0xff]   ;;  %v2467_v62 = vld [vmem:[%s3219_s4] sm:$0xff]  }
 0x241   : > { %v666_v0 = vpop.f32.mrf.mxu0  ;;  %v772_v1 = vpop.f32.mrf.mxu1 }
 0x242   : > { %v671_v8 = vadd.f32 %v666_v0, %v581_v6 }
 0x243   : > { %v2214_v2 = vpop.f32.mrf.mxu0  ;;  %v2228_v3 = vpop.f32.mrf.mxu1 }
 0x244   : > { %v777_v13 = vadd.f32 %v772_v1, %v671_v8 }
 0x251   : > { %v875_v10 = vpop.f32.mrf.mxu0 }
 0x252   : > { %v882_v11 = vadd.f32 %v875_v10, %v776_v7 }
 0x253   : > { %v2241_v12 = vpop.f32.mrf.mxu0 }
 0x254   : > { %v888_v14 = vadd.f32 %v1977_v9, %v882_v11 }
 0x255   : > { %v878_v15 = vpop.f32.mrf.mxu0 }
 0x256   : > { %v883_v17 = vadd.f32 %v878_v15, %v777_v13  ;;  %v2953_v19 = vmax.f32 %v888_v14, 0.0 }
 0x257   : > { %v2242_v18 = vpop.f32.mrf.mxu0 }
 0x258   : > { %v889_v20 = vadd.f32 %v1977_v9, %v883_v17  ;;  %v906_v25 = vrot.slane %v2953_v19, 7  ;;  %v1223_v57 = vrot.slane %v2953_v19, 2  ;;  %v892_v43 = vrot.slane %v2953_v19, 6 }
 0x259   : > { %v1138_v53 = vrot.slane %v2953_v19, 1 }
 0x25a   : > { %v2955_v21 = vmax.f32 %v889_v20, 0.0 }
 0x25c   : > { %v1058_v24 = vpack.c.bf16 %v2955_v21, %v2953_v19  ;;  %v907_v26 = vrot.slane %v2955_v21, 7  ;;  %v1224_v34 = vrot.slane %v2955_v21, 2  ;;  %v893_v39 = vrot.slane %v2955_v21, 6 }
 0x25d   : > { %v1139_v52 = vrot.slane %v2955_v21, 1 }
 0x25e   : > { %2276 = vmatmul.mubr.msk.bf16.vlgmr.msra.gmra.mxu0 %vm945_vm0, %v1058_v24  ;;  %v908_v27 = vsel %vm408_vm8, %v906_v25, %v907_v26  ;;  %v909_v28 = vsel %vm408_vm8, %v907_v26, %v906_v25  ;;  %v1225_v37 = vsel %vm780_vm4, %v1223_v57, %v1224_v34  ;;  %v1226_v38 = vsel %vm780_vm4, %v1224_v34, %v1223_v57  ;;  %v2035_v25 = vld [vmem:[#allocation2 + $0x3] ss:$0 sm:$0xff] }
 0x25f   : > { %2292 = vmatpush3.bf16.msra.mxu0 %v2452_v22  ;;  %v910_v29 = vpack.c.bf16 %v908_v27, %v909_v28  ;;  %2299 = vmatprep.mubr.msk.bf16.mxu0 %vm2600_vm1, %v2599_v16  ;;  %v1227_v44 = vpack.c.bf16 %v1226_v38, %v1225_v37  ;;  %v894_v45 = vsel %vm379_vm9, %v892_v43, %v893_v39 }
 0x260   : > { %2293 = vmatprep.subr.bf16.mxu0 %v2599_v16  ;;  %v895_v46 = vsel %vm379_vm9, %v893_v39, %v892_v43  ;;  %v1140_v54 = vsel %vm674_vm14, %v1138_v53, %v1139_v52  ;;  %v1141_v55 = vsel %vm674_vm14, %v1139_v52, %v1138_v53  ;;  %v2468_v53 = vld [vmem:[%s3219_s4 + $0x38] sm:$0xff]  }
 0x261   : > { %v911_v33 = vsel %vm2793_vm10, %v910_v29, 0  ;;  %v1228_v48 = vsel %vm2911_vm5, %v1227_v44, 0  ;;  %v896_v49 = vpack.c.bf16 %v894_v45, %v895_v46  ;;  %v1142_v59 = vpack.c.bf16 %v1141_v55, %v1140_v54  ;;  %v2469_v54 = vld [vmem:[%s3219_s4 + $0x30] sm:$0xff]   ;;  %v2470_v55 = vld [vmem:[%s3219_s4 + $0x28] sm:$0xff]  }
 0x262   : > { %2252 = vmatmul.mubr.msk.bf16.vlgmr.msra.gmra.mxu1 %vm945_vm0, %v911_v33 }
 0x263   : > { %2256 = vmatpush3.bf16.msra.mxu1 %v2453_v30  ;;  %2294 = vmatpush3.bf16.msra.mxu0 %v2454_v32  ;;  %v897_v51 = vsel %vm2797_vm11, %v896_v49, 0  ;;  %v1143_v60 = vsel %vm2867_vm15, %v1142_v59, 0  ;;  %v2472_v59 = vld [vmem:[%s3219_s4 + $0x58] sm:$0xff]  }
 0x264   : > { %2257 = vmatprep.subr.bf16.mxu1 %v2599_v16  ;;  %2295 = vmatprep.subr.bf16.mxu0 %v2599_v16 }
 0x265   : > { %2263 = vmatprep.mubr.msk.bf16.mxu1 %vm2600_vm1, %v2599_v16 }
 0x267   : > { %2258 = vmatpush3.bf16.msra.mxu1 %v2455_v35  ;;  %2296 = vmatpush3.bf16.msra.mxu0 %v2456_v36  ;;  %v2060_v36 = vld [vmem:[#allocation2 + $0x4] ss:$0 sm:$0xff] }
 0x268   : > { %2259 = vmatprep.subr.bf16.mxu1 %v2599_v16  ;;  %2297 = vmatprep.subr.bf16.mxu0 %v2599_v16 }
 0x26b   : > { %2260 = vmatpush3.bf16.msra.mxu1 %v2457_v41  ;;  %2298 = vmatpush3.bf16.msra.mxu0 %v2458_v42 }
 0x26c   : > { %2261 = vmatprep.subr.bf16.mxu1 %v2599_v16  ;;  %2315 = vmatprep.subr.bf16.mxu0 %v2599_v16 }
 0x26e   : > { %2300 = vmatmul.mubr.msk.bf16.vlgmr.msra.gmra.mxu0 %vm945_vm0, %v1228_v48 }
 0x26f   : > { %2262 = vmatpush3.bf16.msra.mxu1 %v2459_v47  ;;  %2323 = vmatprep.mubr.msk.bf16.mxu0 %vm2600_vm1, %v2599_v16 }
 0x270   : > { %2279 = vmatprep.subr.bf16.mxu1 %v2599_v16  ;;  %2316 = vmatpush3.bf16.msra.mxu0 %v2468_v53 }
 0x271   : > { %2317 = vmatprep.subr.bf16.mxu0 %v2599_v16 }
 0x272   : > { %2264 = vmatmul.mubr.msk.bf16.vlgmr.msra.gmra.mxu1 %vm945_vm0, %v897_v51 }
 0x273   : > { %2280 = vmatpush3.bf16.msra.mxu1 %v2460_v50  ;;  %2287 = vmatprep.mubr.msk.bf16.mxu1 %vm2600_vm1, %v2599_v16 }
 0x274   : > { %2281 = vmatprep.subr.bf16.mxu1 %v2599_v16  ;;  %2318 = vmatpush3.bf16.msra.mxu0 %v2469_v54 }
 0x275   : > { %2319 = vmatprep.subr.bf16.mxu0 %v2599_v16 }
 0x277   : > { %2282 = vmatpush3.bf16.msra.mxu1 %v2461_v40 }
 0x278   : > { %2283 = vmatprep.subr.bf16.mxu1 %v2599_v16  ;;  %2320 = vmatpush3.bf16.msra.mxu0 %v2470_v55 }
 0x279   : > { %2321 = vmatprep.subr.bf16.mxu0 %v2599_v16 }
 0x27b   : > { %2284 = vmatpush3.bf16.msra.mxu1 %v2462_v58 }
 0x27c   : > { %2285 = vmatprep.subr.bf16.mxu1 %v2599_v16 }
 0x27f   : > { %2286 = vmatpush3.bf16.msra.mxu1 %v2463_v56  ;;  %v2471_v56 = vld [vmem:[%s3219_s4 + $0x20] sm:$0xff]  }
 0x280   : > { %2303 = vmatprep.subr.bf16.mxu1 %v2599_v16  ;;  %2322 = vmatpush3.bf16.msra.mxu0 %v2471_v56 }
 0x281   : > { %2339 = vmatprep.subr.bf16.mxu0 %v2599_v16 }
 0x282   : > { %2288 = vmatmul.mubr.msk.bf16.vlgmr.msra.gmra.mxu1 %vm945_vm0, %v1143_v60  ;;  %v2473_v60 = vld [vmem:[%s3219_s4 + $0x50] sm:$0xff]  }
 0x283   : > { %2311 = vmatprep.mubr.msk.bf16.mxu1 %vm2600_vm1, %v2599_v16  ;;  %2304 = vmatpush3.bf16.msra.mxu1 %v2464_v31 }
 0x284   : > { %2305 = vmatprep.subr.bf16.mxu1 %v2599_v16 }
 0x287   : > { %2306 = vmatpush3.bf16.msra.mxu1 %v2465_v61 }
 0x288   : > { %2307 = vmatprep.subr.bf16.mxu1 %v2599_v16 }
 0x28b   : > { %2308 = vmatpush3.bf16.msra.mxu1 %v2466_v23 }
 0x28c   : > { %2309 = vmatprep.subr.bf16.mxu1 %v2599_v16 }
 0x28f   : > { %2310 = vmatpush3.bf16.msra.mxu1 %v2467_v62 }
 0x290   : > { %2327 = vmatprep.subr.bf16.mxu1 %v2599_v16 }
 0x31e   : > { %v1129_v63 = vpop.f32.mrf.mxu0 }
 0x320   : > { %v2277_v0 = vpop.f32.mrf.mxu0 }
 0x322   : > { %v983_v1 = vpop.f32.mrf.mxu1  ;;  %v1132_v2 = vpop.f32.mrf.mxu0 }
 0x324   : > { %v2253_v3 = vpop.f32.mrf.mxu1  ;;  %v2278_v4 = vpop.f32.mrf.mxu0 }
 0x325   : > { %v3101_v3 = vld [vmem:[#allocation2 + $0x5] ss:$0 sm:$0xff] }
 0x326   : > { %v986_v5 = vpop.f32.mrf.mxu1 }
 0x328   : > { %v2254_v6 = vpop.f32.mrf.mxu1 }
 0x32e   : > { %v1299_v7 = vpop.f32.mrf.mxu0 }
 0x330   : > { %v2301_v8 = vpop.f32.mrf.mxu0 }
 0x332   : > { %v1051_v9 = vpop.f32.mrf.mxu1  ;;  %v1302_v10 = vpop.f32.mrf.mxu0 }
 0x333   : > { %v1052_v15 = vadd.f32 %v1051_v9, %v983_v1 }
 0x334   : > { %v2265_v11 = vpop.f32.mrf.mxu1  ;;  %v2302_v12 = vpop.f32.mrf.mxu0 }
 0x335   : > { %v1136_v18 = vadd.f32 %v1129_v63, %v1052_v15  ;;  %v2474_v12 = vld [vmem:[%s3219_s4 + $0x48] sm:$0xff]   ;;  %v2068_v15 = vld [vmem:[#allocation2 + $0x7] ss:$0 sm:$0xff] }
 0x336   : > { %v1054_v13 = vpop.f32.mrf.mxu1 }
 0x337   : > { %v1055_v17 = vadd.f32 %v1054_v13, %v986_v5  ;;  %v2475_v13 = vld [vmem:[%s3219_s4 + $0x40] sm:$0xff]  }
 0x338   : > { %v2266_v14 = vpop.f32.mrf.mxu1 }
 0x339   : > { %v1137_v24 = vadd.f32 %v1132_v2, %v1055_v17 }
 0x342   : > { %v1214_v19 = vpop.f32.mrf.mxu1 }
 0x343   : > { %v1221_v20 = vadd.f32 %v1214_v19, %v1136_v18 }
 0x344   : > { %v2289_v21 = vpop.f32.mrf.mxu1 }
 0x345   : > { %v1306_v22 = vadd.f32 %v1299_v7, %v1221_v20  ;;  %v3104_v7 = vld [vmem:[#allocation2 + $0x6] ss:$0 sm:$0xff] }
 0x346   : > { %v1217_v26 = vpop.f32.mrf.mxu1 }
 0x347   : > { %v1222_v27 = vadd.f32 %v1217_v26, %v1137_v24  ;;  %v1312_v29 = vadd.f32 %v2035_v25, %v1306_v22 }
 0x348   : > { %v2290_v28 = vpop.f32.mrf.mxu1 }
 0x349   : > { %v1307_v30 = vadd.f32 %v1302_v10, %v1222_v27  ;;  %v1314_v33 = vmax.f32 %v1312_v29, 0.0 }
 0x34b   : > { %v1313_v32 = vadd.f32 %v2035_v25, %v1307_v30 }
 0x34d   : > { %v1315_v34 = vmax.f32 %v1313_v32, 0.0 }
 0x34f   : > { %v1351_v35 = vpack.c.bf16 %v1315_v34, %v1314_v33 }
 0x351   : > { %2312 = vmatmul.mubr.msk.bf16.vlgmr.msra.gmra.mxu1 %vm945_vm0, %v1351_v35 }
 0x352   : > { %2335 = vmatprep.mubr.msk.bf16.mxu1 %vm2600_vm1, %v2599_v16  ;;  %2328 = vmatpush3.bf16.msra.mxu1 %v2472_v59 }
 0x353   : > { %2329 = vmatprep.subr.bf16.mxu1 %v2599_v16 }
 0x356   : > { %2330 = vmatpush3.bf16.msra.mxu1 %v2473_v60 }
 0x357   : > { %2331 = vmatprep.subr.bf16.mxu1 %v2599_v16 }
 0x35a   : > { %2332 = vmatpush3.bf16.msra.mxu1 %v2474_v12 }
 0x35b   : > { %2333 = vmatprep.subr.bf16.mxu1 %v2599_v16 }
 0x35e   : > { %2334 = vmatpush3.bf16.msra.mxu1 %v2475_v13 }
 0x35f   : > { %2351 = vmatprep.subr.bf16.mxu1 %v2599_v16 }
 0x411   : > { %v1417_v57 = vpop.f32.mrf.mxu1 }
 0x412   : > { %v1418_v37 = vadd.f32 %v2060_v36, %v1417_v57 }
 0x413   : > { %v2313_v38 = vpop.f32.mrf.mxu1 }
 0x414   : > { %v1424_v39 = vsel %vm945_vm0, %v1418_v37, 0.0 }
 0x415   : > { %1425 = vadd.xlane.f32.xlu0 %v1424_v39  ;;  %v1420_v41 = vpop.f32.mrf.mxu1 }
 0x416   : > { %v1421_v42 = vadd.f32 %v2060_v36, %v1420_v41  ;;  %v2476_v41 = vld [vmem:[%s3219_s4 + $0x78] sm:$0xff]  }
 0x417   : > { %v2314_v43 = vpop.f32.mrf.mxu1 }
 0x418   : > { %v1427_v44 = vsel %vm945_vm0, %v1421_v42, 0.0  ;;  %v2478_v43 = vld [vmem:[%s3219_s4 + $0x68] sm:$0xff]  }
 0x419   : > { %1428 = vadd.xlane.f32.xlu1 %v1427_v44  ;;  %v2479_v44 = vld [vmem:[%s3219_s4 + $0x60] sm:$0xff]  }
 0x49e   : > { %v1426_v45 = vpop.xlane.xlu0 %1425 }
 0x49f   : > { %v1431_v46 = vmul.f32 0.015625, %v1426_v45 }
 0x4a1   : > { %v1433_v47 = vsub.f32 %v1418_v37, %v1431_v46 }
 0x4a2   : > { %v1429_v48 = vpop.xlane.xlu1 %1428 }
 0x4a3   : > { %v1432_v49 = vmul.f32 0.015625, %v1429_v48  ;;  %v1435_v50 = vmul.f32 %v1433_v47, %v1433_v47 }
 0x4a5   : > { %v1434_v51 = vsub.f32 %v1421_v42, %v1432_v49  ;;  %v1437_v40 = vsel %vm945_vm0, %v1435_v50, 0.0  ;;  %v2477_v42 = vld [vmem:[%s3219_s4 + $0x70] sm:$0xff]  }
 0x4a6   : > { %1438 = vadd.xlane.f32.xlu0 %v1437_v40 }
 0x4a7   : > { %v1436_v52 = vmul.f32 %v1434_v51, %v1434_v51 }
 0x4a9   : > { %v1440_v58 = vsel %vm945_vm0, %v1436_v52, 0.0 }
 0x4aa   : > { %1441 = vadd.xlane.f32.xlu1 %v1440_v58 }
 0x52f   : > { %v1439_v31 = vpop.xlane.xlu0 %1438 }
 0x530   : > { %v1443_v61 = vmul.f32 0.015625, %v1439_v31 }
 0x532   : > { %v1445_v23 = vadd.f32 1e-05, %v1443_v61 }
 0x533   : > { %v1442_v62 = vpop.xlane.xlu1 %1441 }
 0x534   : > { %2488 = vrsqrt.f32 %v1445_v23  ;;  %v1444_v63 = vmul.f32 0.015625, %v1442_v62 }
 0x536   : > { %v1446_v0 = vadd.f32 1e-05, %v1444_v63 }
 0x538   : > { %2490 = vrsqrt.f32 %v1446_v0 }
 0x541   : > { %v2489_v1 = vpop.eup %2488 }
 0x542   : > { %v1449_v2 = vmul.f32 %v2489_v1, %v1433_v47 }
 0x544   : > { %v1455_v6 = vmul.f32 %v3101_v3, %v1449_v2  ;;  %v2480_v2 = vld [vmem:[%s3220_s5 + $0x18] sm:$0xff]  }
 0x545   : > { %v2491_v4 = vpop.eup %2490 }
 0x546   : > { %v1450_v5 = vmul.f32 %v2491_v4, %v1434_v51  ;;  %v1461_v9 = vadd.f32 %v3104_v7, %v1455_v6  ;;  %v2481_v4 = vld [vmem:[%s3220_s5 + $0x10] sm:$0xff]   ;;  %v2483_v6 = vld [vmem:[%s3220_s5] sm:$0xff]  }
 0x548   : > { %v1456_v8 = vmul.f32 %v3101_v3, %v1450_v5  ;;  %v2482_v5 = vld [vmem:[%s3220_s5 + $0x8] sm:$0xff]  }
 0x54a   : > { %v1462_v10 = vadd.f32 %v3104_v7, %v1456_v8 }
 0x54c   : > { %v1463_v11 = vpack.c.bf16 %v1462_v10, %v1461_v9 }
 0x54e   : > { %2324 = vmatmul.mubr.msk.bf16.vlgmr.msra.gmra.mxu0 %vm945_vm0, %v1463_v11 }
 0x54f   : > { %2347 = vmatprep.mubr.msk.bf16.mxu0 %vm2600_vm1, %v2599_v16  ;;  %2340 = vmatpush3.bf16.msra.mxu0 %v2476_v41 }
 0x550   : > { %2341 = vmatprep.subr.bf16.mxu0 %v2599_v16 }
 0x553   : > { %2342 = vmatpush3.bf16.msra.mxu0 %v2477_v42 }
 0x554   : > { %2343 = vmatprep.subr.bf16.mxu0 %v2599_v16 }
 0x557   : > { %2344 = vmatpush3.bf16.msra.mxu0 %v2478_v43 }
 0x558   : > { %2345 = vmatprep.subr.bf16.mxu0 %v2599_v16 }
 0x55b   : > { %2346 = vmatpush3.bf16.msra.mxu0 %v2479_v44 }
 0x60e   : > { %v1529_v14 = vpop.f32.mrf.mxu0 }
 0x60f   : > { %v1530_v19 = vadd.f32 %v2068_v15, %v1529_v14 }
 0x610   : > { %v2325_v17 = vpop.f32.mrf.mxu0 }
 0x612   : > { %v1532_v18 = vpop.f32.mrf.mxu0 }
 0x613   : > { %v1533_v20 = vadd.f32 %v2068_v15, %v1532_v18 }
 0x614   : > { %v2326_v21 = vpop.f32.mrf.mxu0 }
 0x615   : > { %v1536_v22 = vpack.c.bf16 %v1533_v20, %v1530_v19 }
 0x617   : > { %2336 = vmatmul.mubr.msk.bf16.vlgmr.msra.gmra.mxu1 %vm945_vm0, %v1536_v22 }
 0x618   : > { %2359 = vmatprep.mubr.msk.bf16.mxu1 %vm2600_vm1, %v2599_v16  ;;  %2352 = vmatpush3.bf16.msra.mxu1 %v2480_v2 }
 0x619   : > { %2353 = vmatprep.subr.bf16.mxu1 %v2599_v16 }
 0x61c   : > { %2354 = vmatpush3.bf16.msra.mxu1 %v2481_v4 }
 0x61d   : > { %2355 = vmatprep.subr.bf16.mxu1 %v2599_v16 }
 0x620   : > { %2356 = vmatpush3.bf16.msra.mxu1 %v2482_v5 }
 0x621   : > { %2357 = vmatprep.subr.bf16.mxu1 %v2599_v16 }
 0x624   : > { %2358 = vmatpush3.bf16.msra.mxu1 %v2483_v6 }
 0x6d7   : > { %v1598_v24 = vpop.f32.mrf.mxu1 }
 0x6d8   : > { %v1605_v25 = vsel %vm945_vm0, %v1598_v24, -inf }
 0x6d9   : > { %1606 = vmax.xlane.f32.xlu0 %v1605_v25  ;;  %v2337_v26 = vpop.f32.mrf.mxu1 }
 0x6db   : > { %v1601_v27 = vpop.f32.mrf.mxu1 }
 0x6dc   : > { %v1608_v28 = vsel %vm945_vm0, %v1601_v27, -inf }
 0x6dd   : > { %1609 = vmax.xlane.f32.xlu1 %v1608_v28  ;;  %v2338_v29 = vpop.f32.mrf.mxu1 }
 0x762   : > { %v1607_v30 = vpop.xlane.xlu0 %1606 }
 0x763   : > { %v1611_v32 = vsub.f32 %v1598_v24, %v1607_v30 }
 0x765   : > { %v1613_v33 = vmul.f32 1.442695, %v1611_v32 }
 0x766   : > { %v1610_v34 = vpop.xlane.xlu1 %1609 }
 0x767   : > { %2492 = vpow2.f32 %v1613_v33  ;;  %v1612_v35 = vsub.f32 %v1601_v27, %v1610_v34 }
 0x769   : > { %v1615_v36 = vmul.f32 1.442695, %v1612_v35 }
 0x76b   : > { %2494 = vpow2.f32 %v1615_v36 }
 0x774   : > { %v2493_v57 = vpop.eup %2492 }
 0x775   : > { %v1617_v37 = vsel %vm945_vm0, %v2493_v57, 0.0 }
 0x776   : > { %1618 = vadd.xlane.f32.xlu0 %v1617_v37 }
 0x778   : > { %v2495_v38 = vpop.eup %2494 }
 0x779   : > { %v1620_v39 = vsel %vm945_vm0, %v2495_v38, 0.0 }
 0x77a   : > { %1621 = vadd.xlane.f32.xlu1 %v1620_v39 }
 0x7ff   : > { %v1619_v45 = vpop.xlane.xlu0 %1618 }
 0x800   : > { %2496 = vrcp.f32 %v1619_v45 }
 0x803   : > { %v1622_v46 = vpop.xlane.xlu1 %1621 }
 0x804   : > { %2498 = vrcp.f32 %v1622_v46 }
 0x80d   : > { %v2497_v47 = vpop.eup %2496 }
 0x80e   : > { %v1625_v49 = vmul.f32 %v2497_v47, %v2493_v57 }
 0x811   : > { %v2499_v48 = vpop.eup %2498 }
 0x812   : > { %v1626_v50 = vmul.f32 %v2499_v48, %v2495_v38 }
 0x814   : > { %v1627_v51 = vpack.c.bf16 %v1626_v50, %v1625_v49 }
 0x816   : > { %2348 = vmatmul.mubr.msk.bf16.vlgmr.msra.gmra.mxu0 %vm945_vm0, %v1627_v51 }
 0x8d6   : > { %v1689_v40 = vpop.f32.mrf.mxu0 }
 0x8d7   : > { %v1696_v52 = vsel %vm945_vm0, %v1689_v40, 0.0 }
 0x8d8   : > { %1697 = vadd.xlane.f32.xlu0 %v1696_v52  ;;  %v2349_v58 = vpop.f32.mrf.mxu0 }
 0x8da   : > { %v1692_v53 = vpop.f32.mrf.mxu0 }
 0x8db   : > { %v1699_v54 = vsel %vm945_vm0, %v1692_v53, 0.0 }
 0x8dc   : > { %1700 = vadd.xlane.f32.xlu1 %v1699_v54  ;;  %v2350_v55 = vpop.f32.mrf.mxu0 }
 0x961   : > { %v1698_v56 = vpop.xlane.xlu0 %1697 }
 0x962   : > { %v1702_v59 = vmul.f32 0.015625, %v1698_v56 }
 0x964   : > { %v1704_v60 = vsub.f32 %v1689_v40, %v1702_v59 }
 0x965   : > { %v1701_v31 = vpop.xlane.xlu1 %1700 }
 0x966   : > { %v1703_v61 = vmul.f32 0.015625, %v1701_v31  ;;  %v1706_v23 = vmul.f32 %v1704_v60, %v1704_v60 }
 0x968   : > { %v1705_v62 = vsub.f32 %v1692_v53, %v1703_v61  ;;  %v1708_v63 = vsel %vm945_vm0, %v1706_v23, 0.0 }
 0x969   : > { %1709 = vadd.xlane.f32.xlu0 %v1708_v63 }
 0x96a   : > { %v1707_v0 = vmul.f32 %v1705_v62, %v1705_v62 }
 0x96c   : > { %v1711_v1 = vsel %vm945_vm0, %v1707_v0, 0.0 }
 0x96d   : > { %1712 = vadd.xlane.f32.xlu1 %v1711_v1 }
 0x9f2   : > { %v1710_v8 = vpop.xlane.xlu0 %1709 }
 0x9f3   : > { %v1714_v9 = vmul.f32 0.015625, %v1710_v8 }
 0x9f5   : > { %v1716_v10 = vadd.f32 1e-05, %v1714_v9 }
 0x9f6   : > { %v1713_v11 = vpop.xlane.xlu1 %1712 }
 0x9f7   : > { %2500 = vrsqrt.f32 %v1716_v10  ;;  %v1715_v12 = vmul.f32 0.015625, %v1713_v11 }
 0x9f9   : > { %v1717_v13 = vadd.f32 1e-05, %v1715_v12 }
 0x9fb   : > { %2502 = vrsqrt.f32 %v1717_v13 }
 0xa04   : > { %v2501_v14 = vpop.eup %2500 }
 0xa05   : > { %v1720_v15 = vmul.f32 %v2501_v14, %v1704_v60 }
 0xa07   : > { %v1722_v17 = vmul.f32 %v3101_v3, %v1720_v15 }
 0xa08   : > { %v2503_v18 = vpop.eup %2502 }
 0xa09   : > { %v1721_v19 = vmul.f32 %v2503_v18, %v1705_v62  ;;  %v1724_v20 = vadd.f32 %v3104_v7, %v1722_v17 }
 0xa0b   : > { %v1723_v16 = vmul.f32 %v3101_v3, %v1721_v19  ;;  %v1726_v22 = vsel %vm945_vm0, %v1724_v20, 0.0  ;;  %v275_v3 = vld [vmem:[#allocation2 + $0x8] sm:$0x1] }
 0xa0d   : > { %v1725_v21 = vadd.f32 %v3104_v7, %v1723_v16 }
 0xa0f   : > { %v1727_v24 = vsel %vm945_vm0, %v1725_v21, 0.0 }
 0xa10   : > { %v1728_v25 = vadd.f32 %v1727_v24, %v1726_v22 }
 0xa12   : > { %v1729_v26 = vrot.slane %v1728_v25, 4 }
 0xa14   : > { %v1730_v27 = vadd.f32 %v1729_v26, %v1728_v25 }
 0xa16   : > { %v1731_v28 = vrot.slane %v1730_v27, 2 }
 0xa18   : > { %v1732_v29 = vadd.f32 %v1731_v28, %v1730_v27 }
 0xa1a   : > { %v1733_v30 = vrot.slane %v1732_v29, 1 }
 0xa1c   : > { %v1734_v32 = vadd.f32 %v1733_v30, %v1732_v29 }
 0xa1e   : > { %v1735_v33 = vmul.f32 0.0625, %v1734_v32 }
 0xa20   : > { %v1736_v34 = vpack.c.bf16 %v1735_v33, %v1735_v33 }
 0xa22   : > { %2360 = vmatmul.mubr.msk.bf16.vlgmr.msra.gmra.mxu1 %vm945_vm0, %v1736_v34 }
 0xae2   : > { %v1806_v7 = vpop.f32.mrf.mxu1 }
 0xae3   : > { %v1807_v35 = vadd.f32 %v1806_v7, %v275_v3 }
 0xae4   : > { %v2361_v36 = vpop.f32.mrf.mxu1 }
 0xae5   : > { %1812 = vst [vmem:[%s258_s19] sm:$0x1] %v1807_v35 }
 0xae6   : > { %v1809_v57 = vpop.f32.mrf.mxu1 }
 0xae7   : > { %2543 = shalt.err (!%p2540_p0)
}
 0xae8   : > { %s2544_s13 = scalar_lea.hbm %s3174_s29, 16  ;;  %s2548_s16 = scalar_lea.hbm %s3221_s6, 32 }
 0xae9   : > { %p2545_p1 = scmp.ne.s32.totalorder %s3174_s29, %s2544_s13  ;;  %p2549_p4 = scmp.lt.s32.totalorder %s3174_s29, %s3221_s6 }
 0xaea   : > { %p2550_p7 = scmp.lt.s32.totalorder %s2548_s16, %s2544_s13 }
 0xaeb   : > { %p2546_p2 = pnand %p2545_p1, %p2677_p5 }
 0xaec   : > { %p2551_p8 = por %p2550_p7, %p2549_p4 }
 0xaed   : > { %p2547_p3 = pneg %p2546_p2 }
 0xaef   : > { %p2552_p6 = pnand %p2551_p8, %p2547_p3 }
 0xaf1   : > { %2555 = shalt.err (!%p2552_p6)
}
 0xaf2   : > { %2367 = dma.vmem_to_hbm [thread:$0]  (%p2677_p5), %s3176_s20, 16, %s3174_s29, %s1814_s9   ;;  %v2362_v37 = vpop.f32.mrf.mxu1 }
 0xaf3 PF: > { %p2379_p9 = scmp.ge.s32.totalorder %s2594_s24, 2  ;;  %s1838_s19 = sand.u32 1, %s2582_s21  }
 0xaf4   : > { %p3233_p10 = scmp.ne.s32.totalorder %s3223_s8, 0  ;;  %s1839_s26 = scalar_lea.sflag [#allocation4], %s1838_s19 }
 0xaf6   : > { %p2374_p11 = pnand %p2379_p9, %p3233_p10 }
 0xaf8   : > { %p2375_p12 = pneg %p2374_p11 }
 0xafa   : > { %2577 = dma.done.wait (%p2375_p12), %s1839_s26, 16  }
 0xafb   : > { %2579 = vsyncadd (%p2375_p12), %s1839_s26, 4294967280  ;;  %p17_p13 = scmp.ge.s32.totalorder %s2664_s27, 4   ;;  %s3234_s21 = smov %s2586_s22 }
 0xafc   : > { %s3235_s22 = smov %s2590_s23  ;;  %s3236_s23 = smov %s2675_s30 }
 0xafd   : > { %s3237_s24 = smov %s2664_s27  ;;  %19 = sbr.rel (!%p17_p13) target bundleno = 4 (0x4), region = 95 }
 0xb02   :  { %1843 = vsyncpa [#allocation3], 1 }
 0xb03   :  { %1845 = vsyncpa [#allocation3 + $0x1], 1 }
 0xb04   :  { %1846 = vsyncpa [#allocation4], 1 }
 0xb05   :  { %1848 = vsyncpa [#allocation4 + $0x1], 1 }

</bundles_post_ra>
